<compile_context>
chip_gen: v6e
topology: v6e:2x2x1
jax: 0.10.0
libtpu: 0.0.40
codegen_flags: <defaults>
</compile_context>

<pallas_src>
import math

import jax
import jax.numpy as jnp
from jax import lax
from jax.experimental import pallas as pl
from jax.experimental.pallas import tpu as pltpu

# ---------------- config (small, consistent with the module) ----------------
B = 2          # batch
S = 8          # decoder sequence length
SE = 8         # encoder sequence length
D = 32         # d_model
H = 4          # n_heads
DH = D // H    # head dim
NH = 64        # n_hidden of the feed-forward
LN_EPS = 1e-5

# ---------------- packed-slab layouts (static, module level) ----------------
# Weight slab: D-row (and NH-row) matrices stacked along sublanes, lanes padded
# to the widest (3*D = 96).  Every row offset is a multiple of 8.
_W_LAYOUT = (("wqkv1", D, 3 * D), ("wo1", D, D), ("wq2", D, D),
             ("wkv2", D, 2 * D), ("wo2", D, D), ("fw1", D, NH), ("fw2", NH, D))
W_LANES = max(c for _, _, c in _W_LAYOUT)            # 96
W_OFF = {}
_off = 0
for _name, _r, _c in _W_LAYOUT:
    W_OFF[_name] = (_off, _r, _c)
    _off += _r
W_ROWS = _off                                         # 256

# Vector slab: every (1, D)/(1, NH)/(1, 3D) bias + LayerNorm param as one row.
_V_LAYOUT = (("bqkv1", 3 * D), ("bo1", D), ("bq2", D), ("bkv2", 2 * D),
             ("bo2", D), ("fb1", NH), ("fb2", D),
             ("ln_g", D), ("ln_b", D), ("ln2_g", D), ("ln2_b", D))
V_LANES = max(c for _, c in _V_LAYOUT)                # 96
V_OFF = {name: (i, c) for i, (name, c) in enumerate(_V_LAYOUT)}
V_ROWS = len(_V_LAYOUT)                               # 11

# Constant slab: additive attention mask (head-tiled), scaled head lane mask,
# and unscaled head lane mask, stacked along sublanes.
C_LANES = max(S, D)                                   # 32
C_ROWS = 3 * H * S                                    # 96


# ---------------- in-kernel helpers (pure jnp, traced inside the kernel) ----
def _layer_norm(x, g, b):
    mu = jnp.mean(x, axis=-1, keepdims=True)
    var = jnp.mean((x - mu) ** 2, axis=-1, keepdims=True)
    return (x - mu) * lax.rsqrt(var + LN_EPS) * g + b


def _softmax(x):
    m = jnp.max(x, axis=-1, keepdims=True)
    e = jnp.exp(x - m)
    # Exact divide kept (instead of pl.reciprocal(approx=True)) to preserve
    # tight f32 parity with the reference; cost is negligible at this size.
    return e / jnp.sum(e, axis=-1, keepdims=True)


def _attention(q, k, v, amask, qmask_scaled, hmask_rep, bb, sq, sk):
    """Multi-head attention, 2 MXU pushes per batch element.

    q: (bb*sq, D); k, v: (bb*sk, D)
    amask:        (H*sq, sk) additive mask (head-tiled) or None
    qmask_scaled: (H*sq, D)  row-block h keeps only head-h lanes, pre-scaled
                  by 1/sqrt(DH)
    hmask_rep:    (H*sq, D)  row-block h keeps only head-h lanes (unscaled)
    """
    outs = []
    for b in range(bb):                       # static unroll (bb == B == 2)
        q_b = q[b * sq:(b + 1) * sq, :]
        k_b = k[b * sk:(b + 1) * sk, :]
        v_b = v[b * sk:(b + 1) * sk, :]
        # Sublane-stack head-masked copies of q -> one NT matmul gives every
        # head's score block at once: (H*sq, sk).
        qm = jnp.tile(q_b, (H, 1)) * qmask_scaled
        scores = lax.dot_general(qm, k_b, (((1,), (1,)), ((), ())),
                                 preferred_element_type=jnp.float32)
        if amask is not None:
            scores = scores + amask
        p = _softmax(scores)
        # Single fused PV matmul for all heads: (H*sq, sk) @ (sk, D).
        ctx_full = jnp.dot(p, v_b, preferred_element_type=jnp.float32)
        ctx_masked = ctx_full * hmask_rep     # keep head-h lanes in block h
        ctx = ctx_masked[0:sq, :]
        for h in range(1, H):                 # sublane-aligned adds (VPU only)
            ctx = ctx + ctx_masked[h * sq:(h + 1) * sq, :]
        outs.append(ctx)
    return outs[0] if bb == 1 else jnp.concatenate(outs, axis=0)


def _w(ref, name):
    off, r, c = W_OFF[name]
    return ref[off:off + r, 0:c]


def _v(ref, name):
    row, c = V_OFF[name]
    return ref[row:row + 1, 0:c]


# ---------------- Pallas kernel: whole decoder layer, single grid step ------
def decoder_kernel(x_ref, e_ref, w_ref, v_ref, c_ref, o_ref):
    x = x_ref[...]                 # (B*S, D)
    e = e_ref[...]                 # (B*SE, D)

    amask = c_ref[0:H * S, 0:S]                 # (H*S, S)   additive mask
    qmask = c_ref[H * S:2 * H * S, 0:D]         # (H*S, D)   scaled head mask
    hmask = c_ref[2 * H * S:3 * H * S, 0:D]     # (H*S, D)   head lane mask

    # 1) masked self-attention (fused QKV projection) + residual + LN
    qkv = (jnp.dot(x, _w(w_ref, "wqkv1"), preferred_element_type=jnp.float32)
           + _v(v_ref, "bqkv1"))
    q, k, v = qkv[:, 0:D], qkv[:, D:2 * D], qkv[:, 2 * D:3 * D]
    ctx = _attention(q, k, v, amask, qmask, hmask, B, S, S)
    attn1 = (jnp.dot(ctx, _w(w_ref, "wo1"), preferred_element_type=jnp.float32)
             + _v(v_ref, "bo1"))
    x = _layer_norm(x + attn1, _v(v_ref, "ln_g"), _v(v_ref, "ln_b"))

    # 2) cross-attention over encoder output (fused KV projection) + res + LN
    q2 = (jnp.dot(x, _w(w_ref, "wq2"), preferred_element_type=jnp.float32)
          + _v(v_ref, "bq2"))
    kv2 = (jnp.dot(e, _w(w_ref, "wkv2"), preferred_element_type=jnp.float32)
           + _v(v_ref, "bkv2"))
    k2, v2 = kv2[:, 0:D], kv2[:, D:2 * D]
    ctx2 = _attention(q2, k2, v2, None, qmask, hmask, B, S, SE)
    attn2 = (jnp.dot(ctx2, _w(w_ref, "wo2"), preferred_element_type=jnp.float32)
             + _v(v_ref, "bo2"))
    x = _layer_norm(x + attn2, _v(v_ref, "ln_g"), _v(v_ref, "ln_b"))

    # 3) feed-forward (ReLU; dropout is identity in eval) + residual + LN2
    h1 = jnp.maximum(
        jnp.dot(x, _w(w_ref, "fw1"), preferred_element_type=jnp.float32)
        + _v(v_ref, "fb1"), 0.0)
    ff = (jnp.dot(h1, _w(w_ref, "fw2"), preferred_element_type=jnp.float32)
          + _v(v_ref, "fb2"))
    x = _layer_norm(x + ff, _v(v_ref, "ln2_g"), _v(v_ref, "ln2_b"))

    o_ref[...] = x


# ---------------- one-time parameter / constant packing ---------------------
def pack_params(params):
    """Fuse + pack everything that is constant across forward calls.

    Returns (w_slab, v_slab, c_slab) to be passed to decoder_forward.
    Call this once; it is intentionally outside the jitted hot path.
    """
    (wq1, bq1, wk1, bk1, wv1, bv1, wo1, bo1,
     wq2, bq2, wk2, bk2, wv2, bv2, wo2, bo2,
     ln_g, ln_b, ln2_g, ln2_b,
     fw1, fb1, fw2, fb2) = params

    # Fused projection weights: one MXU push instead of three / two.
    wqkv1 = jnp.concatenate([wq1, wk1, wv1], axis=1)   # (D, 3D)
    bqkv1 = jnp.concatenate([bq1, bk1, bv1], axis=1)   # (1, 3D)
    wkv2 = jnp.concatenate([wk2, wv2], axis=1)         # (D, 2D)
    bkv2 = jnp.concatenate([bk2, bv2], axis=1)         # (1, 2D)

    def pad_lanes(a, lanes):
        return jnp.pad(a, ((0, 0), (0, lanes - a.shape[1])))

    w_mats = {"wqkv1": wqkv1, "wo1": wo1, "wq2": wq2, "wkv2": wkv2,
              "wo2": wo2, "fw1": fw1, "fw2": fw2}
    w_slab = jnp.concatenate(
        [pad_lanes(w_mats[name], W_LANES) for name, _, _ in _W_LAYOUT], axis=0)

    v_vecs = {"bqkv1": bqkv1, "bo1": bo1, "bq2": bq2, "bkv2": bkv2,
              "bo2": bo2, "fb1": fb1, "fb2": fb2,
              "ln_g": ln_g, "ln_b": ln_b, "ln2_g": ln2_g, "ln2_b": ln2_b}
    v_slab = jnp.concatenate(
        [pad_lanes(v_vecs[name], V_LANES) for name, _ in _V_LAYOUT], axis=0)

    # Constant masks (module quirk preserved: triu(..., diagonal=-1) * -999).
    row = jnp.arange(S)[:, None]
    col = jnp.arange(S)[None, :]
    amask = jnp.where(col >= row - 1, -999.0, 0.0).astype(jnp.float32)   # (S,S)
    amask_tiled = jnp.tile(amask, (H, 1))                                # (H*S,S)
    hmask = (jnp.arange(D)[None, :] // DH ==
             jnp.arange(H)[:, None]).astype(jnp.float32)                 # (H,D)
    hmask_rep = jnp.repeat(hmask, S, axis=0)                             # (H*S,D)
    qmask_scaled = hmask_rep * jnp.float32(1.0 / math.sqrt(DH))
    c_slab = jnp.concatenate(
        [pad_lanes(amask_tiled, C_LANES), qmask_scaled, hmask_rep], axis=0)

    return (w_slab.astype(jnp.float32),
            v_slab.astype(jnp.float32),
            c_slab.astype(jnp.float32))


# ---------------- wrapper (hot path) -----------------------------------------
@jax.jit
def decoder_forward(x, e, w_slab, v_slab, c_slab):
    b, s, d = x.shape
    se = e.shape[1]
    x2 = x.reshape(b * s, d)
    e2 = e.reshape(b * se, d)

    # Single grid step over the whole (tiny) batch: avoids duplicated weight
    # DMAs / per-core launch overhead of a 2-TensorCore batch split at this
    # size (latency/overhead-bound kernel).
    vmem = pl.BlockSpec(memory_space=pltpu.MemorySpace.VMEM)
    out2 = pl.pallas_call(
        decoder_kernel,
        out_shape=jax.ShapeDtypeStruct((b * s, d), jnp.float32),
        in_specs=[vmem, vmem, vmem, vmem, vmem],
        out_specs=vmem,
    )(x2, e2, w_slab, v_slab, c_slab)
    return out2.reshape(b, s, d)


# ---------------- pure-JAX reference (for a correctness check) --------------
def reference_forward(x, e, params):
    (wq1, bq1, wk1, bk1, wv1, bv1, wo1, bo1,
     wq2, bq2, wk2, bk2, wv2, bv2, wo2, bo2,
     ln_g, ln_b, ln2_g, ln2_b,
     fw1, fb1, fw2, fb2) = params

    s = x.shape[1]
    row = jnp.arange(s)[:, None]
    col = jnp.arange(s)[None, :]
    mask = jnp.where(col >= row - 1, -999.0, 0.0).astype(jnp.float32)

    def mha(q_in, kv_in, wq, bq, wk, bk, wv, bv, wo, bo, m):
        q = q_in @ wq + bq
        k = kv_in @ wk + bk
        v = kv_in @ wv + bv
        bsz, sq, _ = q.shape
        sk = k.shape[1]
        qh = q.reshape(bsz, sq, H, DH).transpose(0, 2, 1, 3)
        kh = k.reshape(bsz, sk, H, DH).transpose(0, 2, 1, 3)
        vh = v.reshape(bsz, sk, H, DH).transpose(0, 2, 1, 3)
        scores = jnp.einsum('bhqd,bhkd->bhqk', qh, kh) / math.sqrt(DH)
        if m is not None:
            scores = scores + m[None, None]
        attn = jax.nn.softmax(scores, axis=-1)
        ctx = jnp.einsum('bhqk,bhkd->bhqd', attn, vh)
        ctx = ctx.transpose(0, 2, 1, 3).reshape(bsz, sq, D)
        return ctx @ wo + bo

    def ln(v, g, b):
        mu = v.mean(-1, keepdims=True)
        var = ((v - mu) ** 2).mean(-1, keepdims=True)
        return (v - mu) / jnp.sqrt(var + LN_EPS) * g + b

    x = ln(x + mha(x, x, wq1, bq1, wk1, bk1, wv1, bv1, wo1, bo1, mask), ln_g, ln_b)
    x = ln(x + mha(x, e, wq2, bq2, wk2, bk2, wv2, bv2, wo2, bo2, None), ln_g, ln_b)
    h = jnp.maximum(x @ fw1 + fb1, 0.0)
    x = ln(x + (h @ fw2 + fb2), ln2_g, ln2_b)
    return x


# ---------------- deterministic parameter init -------------------------------
def init_params(key):
    keys = jax.random.split(key, 12)
    it = iter(keys)

    def w(k, shape):
        return (0.1 * jax.random.normal(k, shape)).astype(jnp.float32)

    def zeros(shape):
        return jnp.zeros(shape, jnp.float32)

    def ones(shape):
        return jnp.ones(shape, jnp.float32)

    params = []
    # masked self-attention (q, k, v, o)
    for _ in range(4):
        params += [w(next(it), (D, D)), zeros((1, D))]
    # cross-attention (q, k, v, o)
    for _ in range(4):
        params += [w(next(it), (D, D)), zeros((1, D))]
    # shared LayerNorm, LayerNorm2 (module assigns self.normalization twice)
    params += [ones((1, D)), zeros((1, D)), ones((1, D)), zeros((1, D))]
    # feed-forward
    params += [w(next(it), (D, NH)), zeros((1, NH)),
               w(next(it), (NH, D)), zeros((1, D))]
    return params


if __name__ == "__main__":
    key = jax.random.PRNGKey(0)
    kx, ke, kp = jax.random.split(key, 3)
    x = jax.random.normal(kx, (B, S, D), dtype=jnp.float32)
    e = jax.random.normal(ke, (B, SE, D), dtype=jnp.float32)
    params = init_params(kp)

    # One-time packing (fused QKV/KV weights, masks, slabs) -- not in hot path.
    w_slab, v_slab, c_slab = pack_params(params)

    out = decoder_forward(x, e, w_slab, v_slab, c_slab)
    out = jax.block_until_ready(out)

    ref = reference_forward(x, e, params)
    assert out.shape == (B, S, D)
    assert jnp.allclose(out, ref, rtol=1e-4, atol=1e-4), \
        f"max abs err {float(jnp.max(jnp.abs(out - ref)))}"

    print("KERNEL_OK")
</pallas_src>

<mosaic_0001>
module attributes {stable_mosaic.version = 11 : i64} {
  func.func @decoder_kernel(%arg0: memref<16x32xf32, #tpu.memory_space<vmem>>, %arg1: memref<16x32xf32, #tpu.memory_space<vmem>>, %arg2: memref<256x96xf32, #tpu.memory_space<vmem>>, %arg3: memref<11x96xf32, #tpu.memory_space<vmem>>, %arg4: memref<96x32xf32, #tpu.memory_space<vmem>>, %arg5: memref<16x32xf32, #tpu.memory_space<vmem>>) attributes {dimension_semantics = [], scalar_prefetch = 0 : i64, scratch_operands = 0 : i64, tpu.core_type = #tpu.core_type<tc>} {
    %c0 = arith.constant 0 : index
    %c0_0 = arith.constant 0 : index
    %0 = vector.load %arg0[%c0, %c0_0] : memref<16x32xf32, #tpu.memory_space<vmem>>, vector<16x32xf32>
    %c0_1 = arith.constant 0 : index
    %c0_2 = arith.constant 0 : index
    %1 = vector.load %arg1[%c0_1, %c0_2] : memref<16x32xf32, #tpu.memory_space<vmem>>, vector<16x32xf32>
    %c0_3 = arith.constant 0 : index
    %c0_4 = arith.constant 0 : index
    %2 = vector.load %arg4[%c0_3, %c0_4] : memref<96x32xf32, #tpu.memory_space<vmem>>, vector<32x8xf32>
    %c32 = arith.constant 32 : index
    %c0_5 = arith.constant 0 : index
    %3 = vector.load %arg4[%c32, %c0_5] : memref<96x32xf32, #tpu.memory_space<vmem>>, vector<32x32xf32>
    %c64 = arith.constant 64 : index
    %c0_6 = arith.constant 0 : index
    %4 = vector.load %arg4[%c64, %c0_6] : memref<96x32xf32, #tpu.memory_space<vmem>>, vector<32x32xf32>
    %c0_7 = arith.constant 0 : index
    %c0_8 = arith.constant 0 : index
    %5 = vector.load %arg2[%c0_7, %c0_8] : memref<256x96xf32, #tpu.memory_space<vmem>>, vector<32x96xf32>
    %cst = arith.constant dense<0.000000e+00> : vector<16x96xf32>
    %6 = tpu.matmul %0, %5, %cst {dimension_numbers = #tpu.dot_dimension_numbers<[1], [0], [0], [1], [0, 0, 1, 1], [], []>} : vector<16x32xf32>, vector<32x96xf32>, vector<16x96xf32> -> vector<16x96xf32>
    %c0_9 = arith.constant 0 : index
    %c0_10 = arith.constant 0 : index
    %7 = vector.load %arg3[%c0_9, %c0_10] : memref<11x96xf32, #tpu.memory_space<vmem>>, vector<1x96xf32>
    %8 = vector.broadcast %7 : vector<1x96xf32> to vector<16x96xf32>
    %9 = arith.addf %6, %8 : vector<16x96xf32>
    %10 = vector.extract_strided_slice %9 {offsets = [0, 0], sizes = [16, 32], strides = [1, 1]} : vector<16x96xf32> to vector<16x32xf32>
    %11 = vector.extract_strided_slice %9 {offsets = [0, 32], sizes = [16, 32], strides = [1, 1]} : vector<16x96xf32> to vector<16x32xf32>
    %12 = vector.extract_strided_slice %9 {offsets = [0, 64], sizes = [16, 32], strides = [1, 1]} : vector<16x96xf32> to vector<16x32xf32>
    %13 = vector.extract_strided_slice %10 {offsets = [0, 0], sizes = [8, 32], strides = [1, 1]} : vector<16x32xf32> to vector<8x32xf32>
    %14 = vector.extract_strided_slice %11 {offsets = [0, 0], sizes = [8, 32], strides = [1, 1]} : vector<16x32xf32> to vector<8x32xf32>
    %15 = vector.extract_strided_slice %12 {offsets = [0, 0], sizes = [8, 32], strides = [1, 1]} : vector<16x32xf32> to vector<8x32xf32>
    %16 = tpu.concatenate %13, %13, %13, %13 in 0 : vector<8x32xf32>, vector<8x32xf32>, vector<8x32xf32>, vector<8x32xf32> -> vector<32x32xf32>
    %17 = arith.mulf %16, %3 : vector<32x32xf32>
    %cst_11 = arith.constant dense<0.000000e+00> : vector<32x8xf32>
    %18 = tpu.matmul %17, %14, %cst_11 {dimension_numbers = #tpu.dot_dimension_numbers<[1], [1], [0], [0], [0, 0, 1, 0], [], []>} : vector<32x32xf32>, vector<8x32xf32>, vector<32x8xf32> -> vector<32x8xf32>
    %19 = arith.addf %18, %2 : vector<32x8xf32>
    %cst_12 = arith.constant dense<0xFF800000> : vector<32xf32>
    %20 = vector.multi_reduction <maximumf>, %19, %cst_12 [1] : vector<32x8xf32> to vector<32xf32>
    %21 = vector.shape_cast %20 : vector<32xf32> to vector<32x1xf32>
    %22 = vector.broadcast %21 : vector<32x1xf32> to vector<32x8xf32>
    %23 = arith.subf %19, %22 : vector<32x8xf32>
    %24 = math.exp %23 : vector<32x8xf32>
    %cst_13 = arith.constant dense<0.000000e+00> : vector<32xf32>
    %25 = vector.multi_reduction <add>, %24, %cst_13 [1] : vector<32x8xf32> to vector<32xf32>
    %26 = vector.shape_cast %25 : vector<32xf32> to vector<32x1xf32>
    %27 = vector.broadcast %26 : vector<32x1xf32> to vector<32x8xf32>
    %28 = arith.divf %24, %27 : vector<32x8xf32>
    %cst_14 = arith.constant dense<0.000000e+00> : vector<32x32xf32>
    %29 = tpu.matmul %28, %15, %cst_14 {dimension_numbers = #tpu.dot_dimension_numbers<[1], [0], [0], [1], [0, 0, 1, 1], [], []>} : vector<32x8xf32>, vector<8x32xf32>, vector<32x32xf32> -> vector<32x32xf32>
    %30 = arith.mulf %29, %4 : vector<32x32xf32>
    %31 = vector.extract_strided_slice %30 {offsets = [0, 0], sizes = [8, 32], strides = [1, 1]} : vector<32x32xf32> to vector<8x32xf32>
    %32 = vector.extract_strided_slice %30 {offsets = [8, 0], sizes = [8, 32], strides = [1, 1]} : vector<32x32xf32> to vector<8x32xf32>
    %33 = arith.addf %31, %32 : vector<8x32xf32>
    %34 = vector.extract_strided_slice %30 {offsets = [16, 0], sizes = [8, 32], strides = [1, 1]} : vector<32x32xf32> to vector<8x32xf32>
    %35 = arith.addf %33, %34 : vector<8x32xf32>
    %36 = vector.extract_strided_slice %30 {offsets = [24, 0], sizes = [8, 32], strides = [1, 1]} : vector<32x32xf32> to vector<8x32xf32>
    %37 = arith.addf %35, %36 : vector<8x32xf32>
    %38 = vector.extract_strided_slice %10 {offsets = [8, 0], sizes = [8, 32], strides = [1, 1]} : vector<16x32xf32> to vector<8x32xf32>
    %39 = vector.extract_strided_slice %11 {offsets = [8, 0], sizes = [8, 32], strides = [1, 1]} : vector<16x32xf32> to vector<8x32xf32>
    %40 = vector.extract_strided_slice %12 {offsets = [8, 0], sizes = [8, 32], strides = [1, 1]} : vector<16x32xf32> to vector<8x32xf32>
    %41 = tpu.concatenate %38, %38, %38, %38 in 0 : vector<8x32xf32>, vector<8x32xf32>, vector<8x32xf32>, vector<8x32xf32> -> vector<32x32xf32>
    %42 = arith.mulf %41, %3 : vector<32x32xf32>
    %cst_15 = arith.constant dense<0.000000e+00> : vector<32x8xf32>
    %43 = tpu.matmul %42, %39, %cst_15 {dimension_numbers = #tpu.dot_dimension_numbers<[1], [1], [0], [0], [0, 0, 1, 0], [], []>} : vector<32x32xf32>, vector<8x32xf32>, vector<32x8xf32> -> vector<32x8xf32>
    %44 = arith.addf %43, %2 : vector<32x8xf32>
    %cst_16 = arith.constant dense<0xFF800000> : vector<32xf32>
    %45 = vector.multi_reduction <maximumf>, %44, %cst_16 [1] : vector<32x8xf32> to vector<32xf32>
    %46 = vector.shape_cast %45 : vector<32xf32> to vector<32x1xf32>
    %47 = vector.broadcast %46 : vector<32x1xf32> to vector<32x8xf32>
    %48 = arith.subf %44, %47 : vector<32x8xf32>
    %49 = math.exp %48 : vector<32x8xf32>
    %cst_17 = arith.constant dense<0.000000e+00> : vector<32xf32>
    %50 = vector.multi_reduction <add>, %49, %cst_17 [1] : vector<32x8xf32> to vector<32xf32>
    %51 = vector.shape_cast %50 : vector<32xf32> to vector<32x1xf32>
    %52 = vector.broadcast %51 : vector<32x1xf32> to vector<32x8xf32>
    %53 = arith.divf %49, %52 : vector<32x8xf32>
    %cst_18 = arith.constant dense<0.000000e+00> : vector<32x32xf32>
    %54 = tpu.matmul %53, %40, %cst_18 {dimension_numbers = #tpu.dot_dimension_numbers<[1], [0], [0], [1], [0, 0, 1, 1], [], []>} : vector<32x8xf32>, vector<8x32xf32>, vector<32x32xf32> -> vector<32x32xf32>
    %55 = arith.mulf %54, %4 : vector<32x32xf32>
    %56 = vector.extract_strided_slice %55 {offsets = [0, 0], sizes = [8, 32], strides = [1, 1]} : vector<32x32xf32> to vector<8x32xf32>
    %57 = vector.extract_strided_slice %55 {offsets = [8, 0], sizes = [8, 32], strides = [1, 1]} : vector<32x32xf32> to vector<8x32xf32>
    %58 = arith.addf %56, %57 : vector<8x32xf32>
    %59 = vector.extract_strided_slice %55 {offsets = [16, 0], sizes = [8, 32], strides = [1, 1]} : vector<32x32xf32> to vector<8x32xf32>
    %60 = arith.addf %58, %59 : vector<8x32xf32>
    %61 = vector.extract_strided_slice %55 {offsets = [24, 0], sizes = [8, 32], strides = [1, 1]} : vector<32x32xf32> to vector<8x32xf32>
    %62 = arith.addf %60, %61 : vector<8x32xf32>
    %63 = tpu.concatenate %37, %62 in 0 : vector<8x32xf32>, vector<8x32xf32> -> vector<16x32xf32>
    %c32_19 = arith.constant 32 : index
    %c0_20 = arith.constant 0 : index
    %64 = vector.load %arg2[%c32_19, %c0_20] : memref<256x96xf32, #tpu.memory_space<vmem>>, vector<32x32xf32>
    %cst_21 = arith.constant dense<0.000000e+00> : vector<16x32xf32>
    %65 = tpu.matmul %63, %64, %cst_21 {dimension_numbers = #tpu.dot_dimension_numbers<[1], [0], [0], [1], [0, 0, 1, 1], [], []>} : vector<16x32xf32>, vector<32x32xf32>, vector<16x32xf32> -> vector<16x32xf32>
    %c1 = arith.constant 1 : index
    %c0_22 = arith.constant 0 : index
    %66 = vector.load %arg3[%c1, %c0_22] : memref<11x96xf32, #tpu.memory_space<vmem>>, vector<1x32xf32>
    %67 = vector.broadcast %66 : vector<1x32xf32> to vector<16x32xf32>
    %68 = arith.addf %65, %67 : vector<16x32xf32>
    %69 = arith.addf %0, %68 : vector<16x32xf32>
    %c7 = arith.constant 7 : index
    %c0_23 = arith.constant 0 : index
    %70 = vector.load %arg3[%c7, %c0_23] : memref<11x96xf32, #tpu.memory_space<vmem>>, vector<1x32xf32>
    %c8 = arith.constant 8 : index
    %c0_24 = arith.constant 0 : index
    %71 = vector.load %arg3[%c8, %c0_24] : memref<11x96xf32, #tpu.memory_space<vmem>>, vector<1x32xf32>
    %cst_25 = arith.constant dense<0.000000e+00> : vector<16xf32>
    %72 = vector.multi_reduction <add>, %69, %cst_25 [1] : vector<16x32xf32> to vector<16xf32>
    %73 = vector.shape_cast %72 : vector<16xf32> to vector<16x1xf32>
    %cst_26 = arith.constant 3.200000e+01 : f32
    %74 = vector.broadcast %cst_26 : f32 to vector<16x1xf32>
    %75 = arith.divf %73, %74 : vector<16x1xf32>
    %76 = vector.broadcast %75 : vector<16x1xf32> to vector<16x32xf32>
    %77 = arith.subf %69, %76 : vector<16x32xf32>
    %78 = arith.mulf %77, %77 : vector<16x32xf32>
    %cst_27 = arith.constant dense<0.000000e+00> : vector<16xf32>
    %79 = vector.multi_reduction <add>, %78, %cst_27 [1] : vector<16x32xf32> to vector<16xf32>
    %80 = vector.shape_cast %79 : vector<16xf32> to vector<16x1xf32>
    %cst_28 = arith.constant 3.200000e+01 : f32
    %81 = vector.broadcast %cst_28 : f32 to vector<16x1xf32>
    %82 = arith.divf %80, %81 : vector<16x1xf32>
    %83 = vector.broadcast %75 : vector<16x1xf32> to vector<16x32xf32>
    %84 = arith.subf %69, %83 : vector<16x32xf32>
    %cst_29 = arith.constant 9.99999974E-6 : f32
    %85 = vector.broadcast %cst_29 : f32 to vector<16x1xf32>
    %86 = arith.addf %82, %85 : vector<16x1xf32>
    %87 = math.rsqrt %86 : vector<16x1xf32>
    %88 = vector.broadcast %87 : vector<16x1xf32> to vector<16x32xf32>
    %89 = arith.mulf %84, %88 : vector<16x32xf32>
    %90 = vector.broadcast %70 : vector<1x32xf32> to vector<16x32xf32>
    %91 = arith.mulf %89, %90 : vector<16x32xf32>
    %92 = vector.broadcast %71 : vector<1x32xf32> to vector<16x32xf32>
    %93 = arith.addf %91, %92 : vector<16x32xf32>
    %c64_30 = arith.constant 64 : index
    %c0_31 = arith.constant 0 : index
    %94 = vector.load %arg2[%c64_30, %c0_31] : memref<256x96xf32, #tpu.memory_space<vmem>>, vector<32x32xf32>
    %cst_32 = arith.constant dense<0.000000e+00> : vector<16x32xf32>
    %95 = tpu.matmul %93, %94, %cst_32 {dimension_numbers = #tpu.dot_dimension_numbers<[1], [0], [0], [1], [0, 0, 1, 1], [], []>} : vector<16x32xf32>, vector<32x32xf32>, vector<16x32xf32> -> vector<16x32xf32>
    %c2 = arith.constant 2 : index
    %c0_33 = arith.constant 0 : index
    %96 = vector.load %arg3[%c2, %c0_33] : memref<11x96xf32, #tpu.memory_space<vmem>>, vector<1x32xf32>
    %97 = vector.broadcast %96 : vector<1x32xf32> to vector<16x32xf32>
    %98 = arith.addf %95, %97 : vector<16x32xf32>
    %c96 = arith.constant 96 : index
    %c0_34 = arith.constant 0 : index
    %99 = vector.load %arg2[%c96, %c0_34] : memref<256x96xf32, #tpu.memory_space<vmem>>, vector<32x64xf32>
    %cst_35 = arith.constant dense<0.000000e+00> : vector<16x64xf32>
    %100 = tpu.matmul %1, %99, %cst_35 {dimension_numbers = #tpu.dot_dimension_numbers<[1], [0], [0], [1], [0, 0, 1, 1], [], []>} : vector<16x32xf32>, vector<32x64xf32>, vector<16x64xf32> -> vector<16x64xf32>
    %c3 = arith.constant 3 : index
    %c0_36 = arith.constant 0 : index
    %101 = vector.load %arg3[%c3, %c0_36] : memref<11x96xf32, #tpu.memory_space<vmem>>, vector<1x64xf32>
    %102 = vector.broadcast %101 : vector<1x64xf32> to vector<16x64xf32>
    %103 = arith.addf %100, %102 : vector<16x64xf32>
    %104 = vector.extract_strided_slice %103 {offsets = [0, 0], sizes = [16, 32], strides = [1, 1]} : vector<16x64xf32> to vector<16x32xf32>
    %105 = vector.extract_strided_slice %103 {offsets = [0, 32], sizes = [16, 32], strides = [1, 1]} : vector<16x64xf32> to vector<16x32xf32>
    %106 = vector.extract_strided_slice %98 {offsets = [0, 0], sizes = [8, 32], strides = [1, 1]} : vector<16x32xf32> to vector<8x32xf32>
    %107 = vector.extract_strided_slice %104 {offsets = [0, 0], sizes = [8, 32], strides = [1, 1]} : vector<16x32xf32> to vector<8x32xf32>
    %108 = vector.extract_strided_slice %105 {offsets = [0, 0], sizes = [8, 32], strides = [1, 1]} : vector<16x32xf32> to vector<8x32xf32>
    %109 = tpu.concatenate %106, %106, %106, %106 in 0 : vector<8x32xf32>, vector<8x32xf32>, vector<8x32xf32>, vector<8x32xf32> -> vector<32x32xf32>
    %110 = arith.mulf %109, %3 : vector<32x32xf32>
    %cst_37 = arith.constant dense<0.000000e+00> : vector<32x8xf32>
    %111 = tpu.matmul %110, %107, %cst_37 {dimension_numbers = #tpu.dot_dimension_numbers<[1], [1], [0], [0], [0, 0, 1, 0], [], []>} : vector<32x32xf32>, vector<8x32xf32>, vector<32x8xf32> -> vector<32x8xf32>
    %cst_38 = arith.constant dense<0xFF800000> : vector<32xf32>
    %112 = vector.multi_reduction <maximumf>, %111, %cst_38 [1] : vector<32x8xf32> to vector<32xf32>
    %113 = vector.shape_cast %112 : vector<32xf32> to vector<32x1xf32>
    %114 = vector.broadcast %113 : vector<32x1xf32> to vector<32x8xf32>
    %115 = arith.subf %111, %114 : vector<32x8xf32>
    %116 = math.exp %115 : vector<32x8xf32>
    %cst_39 = arith.constant dense<0.000000e+00> : vector<32xf32>
    %117 = vector.multi_reduction <add>, %116, %cst_39 [1] : vector<32x8xf32> to vector<32xf32>
    %118 = vector.shape_cast %117 : vector<32xf32> to vector<32x1xf32>
    %119 = vector.broadcast %118 : vector<32x1xf32> to vector<32x8xf32>
    %120 = arith.divf %116, %119 : vector<32x8xf32>
    %cst_40 = arith.constant dense<0.000000e+00> : vector<32x32xf32>
    %121 = tpu.matmul %120, %108, %cst_40 {dimension_numbers = #tpu.dot_dimension_numbers<[1], [0], [0], [1], [0, 0, 1, 1], [], []>} : vector<32x8xf32>, vector<8x32xf32>, vector<32x32xf32> -> vector<32x32xf32>
    %122 = arith.mulf %121, %4 : vector<32x32xf32>
    %123 = vector.extract_strided_slice %122 {offsets = [0, 0], sizes = [8, 32], strides = [1, 1]} : vector<32x32xf32> to vector<8x32xf32>
    %124 = vector.extract_strided_slice %122 {offsets = [8, 0], sizes = [8, 32], strides = [1, 1]} : vector<32x32xf32> to vector<8x32xf32>
    %125 = arith.addf %123, %124 : vector<8x32xf32>
    %126 = vector.extract_strided_slice %122 {offsets = [16, 0], sizes = [8, 32], strides = [1, 1]} : vector<32x32xf32> to vector<8x32xf32>
    %127 = arith.addf %125, %126 : vector<8x32xf32>
    %128 = vector.extract_strided_slice %122 {offsets = [24, 0], sizes = [8, 32], strides = [1, 1]} : vector<32x32xf32> to vector<8x32xf32>
    %129 = arith.addf %127, %128 : vector<8x32xf32>
    %130 = vector.extract_strided_slice %98 {offsets = [8, 0], sizes = [8, 32], strides = [1, 1]} : vector<16x32xf32> to vector<8x32xf32>
    %131 = vector.extract_strided_slice %104 {offsets = [8, 0], sizes = [8, 32], strides = [1, 1]} : vector<16x32xf32> to vector<8x32xf32>
    %132 = vector.extract_strided_slice %105 {offsets = [8, 0], sizes = [8, 32], strides = [1, 1]} : vector<16x32xf32> to vector<8x32xf32>
    %133 = tpu.concatenate %130, %130, %130, %130 in 0 : vector<8x32xf32>, vector<8x32xf32>, vector<8x32xf32>, vector<8x32xf32> -> vector<32x32xf32>
    %134 = arith.mulf %133, %3 : vector<32x32xf32>
    %cst_41 = arith.constant dense<0.000000e+00> : vector<32x8xf32>
    %135 = tpu.matmul %134, %131, %cst_41 {dimension_numbers = #tpu.dot_dimension_numbers<[1], [1], [0], [0], [0, 0, 1, 0], [], []>} : vector<32x32xf32>, vector<8x32xf32>, vector<32x8xf32> -> vector<32x8xf32>
    %cst_42 = arith.constant dense<0xFF800000> : vector<32xf32>
    %136 = vector.multi_reduction <maximumf>, %135, %cst_42 [1] : vector<32x8xf32> to vector<32xf32>
    %137 = vector.shape_cast %136 : vector<32xf32> to vector<32x1xf32>
    %138 = vector.broadcast %137 : vector<32x1xf32> to vector<32x8xf32>
    %139 = arith.subf %135, %138 : vector<32x8xf32>
    %140 = math.exp %139 : vector<32x8xf32>
    %cst_43 = arith.constant dense<0.000000e+00> : vector<32xf32>
    %141 = vector.multi_reduction <add>, %140, %cst_43 [1] : vector<32x8xf32> to vector<32xf32>
    %142 = vector.shape_cast %141 : vector<32xf32> to vector<32x1xf32>
    %143 = vector.broadcast %142 : vector<32x1xf32> to vector<32x8xf32>
    %144 = arith.divf %140, %143 : vector<32x8xf32>
    %cst_44 = arith.constant dense<0.000000e+00> : vector<32x32xf32>
    %145 = tpu.matmul %144, %132, %cst_44 {dimension_numbers = #tpu.dot_dimension_numbers<[1], [0], [0], [1], [0, 0, 1, 1], [], []>} : vector<32x8xf32>, vector<8x32xf32>, vector<32x32xf32> -> vector<32x32xf32>
    %146 = arith.mulf %145, %4 : vector<32x32xf32>
    %147 = vector.extract_strided_slice %146 {offsets = [0, 0], sizes = [8, 32], strides = [1, 1]} : vector<32x32xf32> to vector<8x32xf32>
    %148 = vector.extract_strided_slice %146 {offsets = [8, 0], sizes = [8, 32], strides = [1, 1]} : vector<32x32xf32> to vector<8x32xf32>
    %149 = arith.addf %147, %148 : vector<8x32xf32>
    %150 = vector.extract_strided_slice %146 {offsets = [16, 0], sizes = [8, 32], strides = [1, 1]} : vector<32x32xf32> to vector<8x32xf32>
    %151 = arith.addf %149, %150 : vector<8x32xf32>
    %152 = vector.extract_strided_slice %146 {offsets = [24, 0], sizes = [8, 32], strides = [1, 1]} : vector<32x32xf32> to vector<8x32xf32>
    %153 = arith.addf %151, %152 : vector<8x32xf32>
    %154 = tpu.concatenate %129, %153 in 0 : vector<8x32xf32>, vector<8x32xf32> -> vector<16x32xf32>
    %c128 = arith.constant 128 : index
    %c0_45 = arith.constant 0 : index
    %155 = vector.load %arg2[%c128, %c0_45] : memref<256x96xf32, #tpu.memory_space<vmem>>, vector<32x32xf32>
    %cst_46 = arith.constant dense<0.000000e+00> : vector<16x32xf32>
    %156 = tpu.matmul %154, %155, %cst_46 {dimension_numbers = #tpu.dot_dimension_numbers<[1], [0], [0], [1], [0, 0, 1, 1], [], []>} : vector<16x32xf32>, vector<32x32xf32>, vector<16x32xf32> -> vector<16x32xf32>
    %c4 = arith.constant 4 : index
    %c0_47 = arith.constant 0 : index
    %157 = vector.load %arg3[%c4, %c0_47] : memref<11x96xf32, #tpu.memory_space<vmem>>, vector<1x32xf32>
    %158 = vector.broadcast %157 : vector<1x32xf32> to vector<16x32xf32>
    %159 = arith.addf %156, %158 : vector<16x32xf32>
    %160 = arith.addf %93, %159 : vector<16x32xf32>
    %c7_48 = arith.constant 7 : index
    %c0_49 = arith.constant 0 : index
    %161 = vector.load %arg3[%c7_48, %c0_49] : memref<11x96xf32, #tpu.memory_space<vmem>>, vector<1x32xf32>
    %c8_50 = arith.constant 8 : index
    %c0_51 = arith.constant 0 : index
    %162 = vector.load %arg3[%c8_50, %c0_51] : memref<11x96xf32, #tpu.memory_space<vmem>>, vector<1x32xf32>
    %cst_52 = arith.constant dense<0.000000e+00> : vector<16xf32>
    %163 = vector.multi_reduction <add>, %160, %cst_52 [1] : vector<16x32xf32> to vector<16xf32>
    %164 = vector.shape_cast %163 : vector<16xf32> to vector<16x1xf32>
    %cst_53 = arith.constant 3.200000e+01 : f32
    %165 = vector.broadcast %cst_53 : f32 to vector<16x1xf32>
    %166 = arith.divf %164, %165 : vector<16x1xf32>
    %167 = vector.broadcast %166 : vector<16x1xf32> to vector<16x32xf32>
    %168 = arith.subf %160, %167 : vector<16x32xf32>
    %169 = arith.mulf %168, %168 : vector<16x32xf32>
    %cst_54 = arith.constant dense<0.000000e+00> : vector<16xf32>
    %170 = vector.multi_reduction <add>, %169, %cst_54 [1] : vector<16x32xf32> to vector<16xf32>
    %171 = vector.shape_cast %170 : vector<16xf32> to vector<16x1xf32>
    %cst_55 = arith.constant 3.200000e+01 : f32
    %172 = vector.broadcast %cst_55 : f32 to vector<16x1xf32>
    %173 = arith.divf %171, %172 : vector<16x1xf32>
    %174 = vector.broadcast %166 : vector<16x1xf32> to vector<16x32xf32>
    %175 = arith.subf %160, %174 : vector<16x32xf32>
    %cst_56 = arith.constant 9.99999974E-6 : f32
    %176 = vector.broadcast %cst_56 : f32 to vector<16x1xf32>
    %177 = arith.addf %173, %176 : vector<16x1xf32>
    %178 = math.rsqrt %177 : vector<16x1xf32>
    %179 = vector.broadcast %178 : vector<16x1xf32> to vector<16x32xf32>
    %180 = arith.mulf %175, %179 : vector<16x32xf32>
    %181 = vector.broadcast %161 : vector<1x32xf32> to vector<16x32xf32>
    %182 = arith.mulf %180, %181 : vector<16x32xf32>
    %183 = vector.broadcast %162 : vector<1x32xf32> to vector<16x32xf32>
    %184 = arith.addf %182, %183 : vector<16x32xf32>
    %c160 = arith.constant 160 : index
    %c0_57 = arith.constant 0 : index
    %185 = vector.load %arg2[%c160, %c0_57] : memref<256x96xf32, #tpu.memory_space<vmem>>, vector<32x64xf32>
    %cst_58 = arith.constant dense<0.000000e+00> : vector<16x64xf32>
    %186 = tpu.matmul %184, %185, %cst_58 {dimension_numbers = #tpu.dot_dimension_numbers<[1], [0], [0], [1], [0, 0, 1, 1], [], []>} : vector<16x32xf32>, vector<32x64xf32>, vector<16x64xf32> -> vector<16x64xf32>
    %c5 = arith.constant 5 : index
    %c0_59 = arith.constant 0 : index
    %187 = vector.load %arg3[%c5, %c0_59] : memref<11x96xf32, #tpu.memory_space<vmem>>, vector<1x64xf32>
    %188 = vector.broadcast %187 : vector<1x64xf32> to vector<16x64xf32>
    %189 = arith.addf %186, %188 : vector<16x64xf32>
    %cst_60 = arith.constant 0.000000e+00 : f32
    %190 = vector.broadcast %cst_60 : f32 to vector<16x64xf32>
    %191 = arith.maximumf %189, %190 : vector<16x64xf32>
    %c192 = arith.constant 192 : index
    %c0_61 = arith.constant 0 : index
    %192 = vector.load %arg2[%c192, %c0_61] : memref<256x96xf32, #tpu.memory_space<vmem>>, vector<64x32xf32>
    %cst_62 = arith.constant dense<0.000000e+00> : vector<16x32xf32>
    %193 = tpu.matmul %191, %192, %cst_62 {dimension_numbers = #tpu.dot_dimension_numbers<[1], [0], [0], [1], [0, 0, 1, 1], [], []>} : vector<16x64xf32>, vector<64x32xf32>, vector<16x32xf32> -> vector<16x32xf32>
    %c6 = arith.constant 6 : index
    %c0_63 = arith.constant 0 : index
    %194 = vector.load %arg3[%c6, %c0_63] : memref<11x96xf32, #tpu.memory_space<vmem>>, vector<1x32xf32>
    %195 = vector.broadcast %194 : vector<1x32xf32> to vector<16x32xf32>
    %196 = arith.addf %193, %195 : vector<16x32xf32>
    %197 = arith.addf %184, %196 : vector<16x32xf32>
    %c9 = arith.constant 9 : index
    %c0_64 = arith.constant 0 : index
    %198 = vector.load %arg3[%c9, %c0_64] : memref<11x96xf32, #tpu.memory_space<vmem>>, vector<1x32xf32>
    %c10 = arith.constant 10 : index
    %c0_65 = arith.constant 0 : index
    %199 = vector.load %arg3[%c10, %c0_65] : memref<11x96xf32, #tpu.memory_space<vmem>>, vector<1x32xf32>
    %cst_66 = arith.constant dense<0.000000e+00> : vector<16xf32>
    %200 = vector.multi_reduction <add>, %197, %cst_66 [1] : vector<16x32xf32> to vector<16xf32>
    %201 = vector.shape_cast %200 : vector<16xf32> to vector<16x1xf32>
    %cst_67 = arith.constant 3.200000e+01 : f32
    %202 = vector.broadcast %cst_67 : f32 to vector<16x1xf32>
    %203 = arith.divf %201, %202 : vector<16x1xf32>
    %204 = vector.broadcast %203 : vector<16x1xf32> to vector<16x32xf32>
    %205 = arith.subf %197, %204 : vector<16x32xf32>
    %206 = arith.mulf %205, %205 : vector<16x32xf32>
    %cst_68 = arith.constant dense<0.000000e+00> : vector<16xf32>
    %207 = vector.multi_reduction <add>, %206, %cst_68 [1] : vector<16x32xf32> to vector<16xf32>
    %208 = vector.shape_cast %207 : vector<16xf32> to vector<16x1xf32>
    %cst_69 = arith.constant 3.200000e+01 : f32
    %209 = vector.broadcast %cst_69 : f32 to vector<16x1xf32>
    %210 = arith.divf %208, %209 : vector<16x1xf32>
    %211 = vector.broadcast %203 : vector<16x1xf32> to vector<16x32xf32>
    %212 = arith.subf %197, %211 : vector<16x32xf32>
    %cst_70 = arith.constant 9.99999974E-6 : f32
    %213 = vector.broadcast %cst_70 : f32 to vector<16x1xf32>
    %214 = arith.addf %210, %213 : vector<16x1xf32>
    %215 = math.rsqrt %214 : vector<16x1xf32>
    %216 = vector.broadcast %215 : vector<16x1xf32> to vector<16x32xf32>
    %217 = arith.mulf %212, %216 : vector<16x32xf32>
    %218 = vector.broadcast %198 : vector<1x32xf32> to vector<16x32xf32>
    %219 = arith.mulf %217, %218 : vector<16x32xf32>
    %220 = vector.broadcast %199 : vector<1x32xf32> to vector<16x32xf32>
    %221 = arith.addf %219, %220 : vector<16x32xf32>
    %c0_71 = arith.constant 0 : index
    %c0_72 = arith.constant 0 : index
    %222 = vector.load %arg5[%c0_71, %c0_72] : memref<16x32xf32, #tpu.memory_space<vmem>>, vector<16x32xf32>
    tpu.vector_store %arg5[%c0_71, %c0_72], %221 {strides = array<i32>} : memref<16x32xf32, #tpu.memory_space<vmem>>, vector<16x32xf32>,
    return
  }
}

</mosaic_0001>

<bundles_post_ra>
// kernel: decoder_forward.1
= control target key start
LH: loop header
LB: loop body
LE: loop exit
PB: predicated region body
PF: predicated region fallthrough
CT: control target
= control target key end

     0   :  { %vm46_vm0 = vcmask 261120   ;;  %s2653_s0 = inlined_call_operand.vmem [shape: f32[16,32], index: 0, kind: input, shape index: {}]   ;;  %s2654_s1 = inlined_call_operand.vmem [shape: f32[16,32], index: 1, kind: input, shape index: {}]   ;;  %s2655_s2 = inlined_call_operand.vmem [shape: f32[256,96], index: 2, kind: input, shape index: {}]   ;;  %s2656_s3 = inlined_call_operand.vmem [shape: f32[11,96], index: 3, kind: input, shape index: {}]   ;;  %s2657_s4 = inlined_call_operand.vmem [shape: f32[96,32], index: 4, kind: input, shape index: {}]   ;;  %s2658_s5 = inlined_call_operand.hbm [shape: f32[16,32], index: 5, kind: output, shape index: {}]  }
   0x1   :  { %v40_v0 = vld [vmem:[%s2655_s2 + $0x18] sm:$0xff]  ;;  %v39_v1 = vld [vmem:[%s2655_s2 + $0x10] sm:$0xff]  ;;  %v2278_v2 = vld [vmem:[%s2653_s0] sm:$0xff] }
   0x2   :  { %1982 = vmatprep.subr.mxu1 %v40_v0  ;;  %v38_v3 = vld [vmem:[%s2655_s2 + $0x8] sm:$0xff]  ;;  %1990 = vmatprep.mubr.msk.f32.mxu1 %vm46_vm0, %v2278_v2 }
   0x3   :  { %1983 = vmatpush3.msra.mxu1 %v40_v0 }
   0x4   :  { %10 = vsyncpa [#allocation3], 0  ;;  %1984 = vmatprep.subr.mxu1 %v39_v1  ;;  %v37_v4 = vld [vmem:[%s2655_s2] sm:$0xff]  ;;  %v2291_v5 = vld [vmem:[%s2653_s0 + $0x8] sm:$0xff]  ;;  %s2234_s0 = smov 96   ;;  %vm234_vm1 = vcmask 64512  }
   0x5   :  { %1985 = vmatpush3.msra.mxu1 %v39_v1  ;;  %v1835_v7 = vld [vmem:[%s2656_s3] ss:$0 sm:$0xff]  ;;  %v2319_v14 = vld [vmem:[%s2657_s4 + $0x28] sm:$0xff]  ;;  %v2326_v16 = vld [vmem:[%s2657_s4 + $0x30] sm:$0xff]  ;;  %s2235_s23 = smov 64   ;;  %vm1693_vm2 = vcmask 523264  }
   0x6   :  { %1986 = vmatprep.subr.mxu1 %v38_v3  ;;  %v2303_v10 = vld [vmem:[%s2657_s4 + $0x20] sm:$0xff]  ;;  %v2337_v19 = vld [vmem:[%s2657_s4 + $0x38] sm:$0xff]  ;;  %v26_v25 = vld [vmem:[%s2657_s4 + $0x8] sm:$0xff]  ;;  %s2236_s29 = smov [#allocation2]  }
   0x7   :  { %1987 = vmatpush3.msra.mxu1 %v38_v3  ;;  %v25_v27 = vld [vmem:[%s2657_s4] sm:$0xff]  ;;  %v28_v32 = vld [vmem:[%s2657_s4 + $0x18] sm:$0xff]  ;;  %v27_v34 = vld [vmem:[%s2657_s4 + $0x10] sm:$0xff]  ;;  %s1824_s30 = sshll.u32 %s2236_s29, 4  ;;  %s1825_s30 = int_to_ptr.vmem [resolvable:$true] %s1824_s30 }
   0x8   :  { %1988 = vmatprep.subr.mxu1 %v37_v4  ;;  %s2212_s6 = scalar_lea.vmem %s1825_s30, 256  ;;  %p2217_p1 = scmp.lt.s32.totalorder %s1825_s30, %s1825_s30 }
   0x9   :  { %1989 = vmatpush3.msra.mxu1 %v37_v4  ;;  %p2213_p0 = scmp.ne.s32.totalorder %s1825_s30, %s2212_s6  ;;  %p2218_p2 = scmp.lt.s32.totalorder %s2212_s6, %s2212_s6 }
   0xa   :  { %1991 = vmatmul.mubr.msk.f32.vlgmr.msra.gmra.mxu1 %vm46_vm0, %v2291_v5 }
   0xb   :  { %p2219_p3 = por %p2218_p2, %p2217_p1 }
   0xd   :  { %p2220_p4 = pnand %p2219_p3, %p2213_p0 }
  0xca   :  { %v1992_v6 = vpop.f32.mrf.mxu1 }
  0xcb   :  { %v2309_v12 = vadd.f32 %v1992_v6, %v1835_v7 }
  0xcc   :  { %v119_v8 = vpop.f32.mrf.mxu1 }
  0xcd   :  { %v2298_v9 = vadd.f32 %v1835_v7, %v119_v8  ;;  %v386_v21 = vmul.f32 %v2309_v12, %v2303_v10  ;;  %v387_v22 = vmul.f32 %v2309_v12, %v2319_v14  ;;  %v388_v23 = vmul.f32 %v2309_v12, %v2326_v16 }
  0xce   :  { %v389_v24 = vmul.f32 %v2309_v12, %v2337_v19 }
  0xcf   :  { %133 = vrot.lane.b32.xlu0 %v2298_v9, %s2234_s0  ;;  %v128_v11 = vmul.f32 %v2298_v9, %v2303_v10  ;;  %v129_v15 = vmul.f32 %v2298_v9, %v2319_v14  ;;  %v130_v18 = vmul.f32 %v2298_v9, %v2326_v16  ;;  %v131_v20 = vmul.f32 %v2298_v9, %v2337_v19 }
  0xd1   :  { %1995 = vmatprep.mubr.msk.f32.mxu1 %vm46_vm0, %v128_v11 }
  0xd3   :  { %391 = vrot.lane.b32.xlu0 %v2309_v12, %s2234_s0 }
 0x141   :  { %v134_v13 = vpop.permute.xlu0 %133 }
 0x142   :  { %1993 = vmatprep.subr.msk.mxu1 %vm46_vm0, %v134_v13 }
 0x143   :  { %1994 = vmatpush3.xpose.msk.msra.mxu1 %vm46_vm0, %v134_v13 }
 0x145   :  { %v392_v17 = vpop.permute.xlu0 %391 }
 0x146   :  { %1996 = vmatmul.mubr.msk.f32.vlgmr.msra.gmra.mxu1 %vm46_vm0, %v129_v15  ;;  %2009 = vmatprep.subr.msk.mxu1 %vm46_vm0, %v392_v17 }
 0x147   :  { %1998 = vmatprep.mubr.msk.f32.mxu1 %vm46_vm0, %v130_v18  ;;  %2010 = vmatpush3.xpose.msk.msra.mxu1 %vm46_vm0, %v392_v17 }
 0x14a   :  { %1999 = vmatmul.mubr.msk.f32.gmra.mxu1 %vm46_vm0, %v131_v20 }
 0x14b   :  { %2011 = vmatprep.mubr.msk.f32.mxu1 %vm46_vm0, %v386_v21 }
 0x14e   :  { %2012 = vmatmul.mubr.msk.f32.vlgmr.msra.gmra.mxu1 %vm46_vm0, %v387_v22 }
 0x14f   :  { %2014 = vmatprep.mubr.msk.f32.mxu1 %vm46_vm0, %v388_v23 }
 0x152   :  { %2015 = vmatmul.mubr.msk.f32.gmra.mxu1 %vm46_vm0, %v389_v24 }
 0x206   :  { %v1997_v26 = vpop.f32.mrf.mxu1 }
 0x207   :  { %v221_v28 = vadd.f32 %v1997_v26, %v26_v25 }
 0x208   :  { %v215_v29 = vpop.f32.mrf.mxu1 }
 0x209   :  { %v216_v30 = vadd.f32 %v215_v29, %v25_v27  ;;  %v238_v31 = vsel %vm234_vm1, %v221_v28, -inf }
 0x20a   :  { %239 = vmax.xlane.f32.xlu1 %v238_v31  ;;  %v2000_v33 = vpop.f32.mrf.mxu1 }
 0x20b   :  { %v231_v36 = vadd.f32 %v2000_v33, %v28_v32  ;;  %v235_v38 = vsel %vm234_vm1, %v216_v30, -inf }
 0x20c   :  { %v225_v35 = vpop.f32.mrf.mxu1 }
 0x20d   :  { %v226_v37 = vadd.f32 %v225_v35, %v27_v34  ;;  %v244_v43 = vsel %vm234_vm1, %v231_v36, -inf }
 0x20e   :  { %v2013_v39 = vpop.f32.mrf.mxu1  ;;  %236 = vmax.xlane.f32.xlu1 %v235_v38 }
 0x20f   :  { %v241_v40 = vsel %vm234_vm1, %v226_v37, -inf  ;;  %v479_v42 = vadd.f32 %v2013_v39, %v26_v25 }
 0x210   :  { %v473_v41 = vpop.f32.mrf.mxu1  ;;  %242 = vmax.xlane.f32.xlu0 %v241_v40 }
 0x211   :  { %v474_v45 = vadd.f32 %v473_v41, %v25_v27  ;;  %v495_v46 = vsel %vm234_vm1, %v479_v42, -inf }
 0x212   :  { %v2016_v44 = vpop.f32.mrf.mxu1  ;;  %245 = vmax.xlane.f32.xlu1 %v244_v43 }
 0x213   :  { %v492_v49 = vsel %vm234_vm1, %v474_v45, -inf  ;;  %v489_v50 = vadd.f32 %v2016_v44, %v28_v32 }
 0x214   :  { %v483_v47 = vpop.f32.mrf.mxu1 }
 0x215   :  { %v484_v48 = vadd.f32 %v483_v47, %v27_v34  ;;  %v501_v52 = vsel %vm234_vm1, %v489_v50, -inf }
 0x216   :  { %496 = vmax.xlane.f32.xlu1 %v495_v46 }
 0x217   :  { %v498_v51 = vsel %vm234_vm1, %v484_v48, -inf }
 0x21a   :  { %493 = vmax.xlane.f32.xlu1 %v492_v49 }
 0x21e   :  { %499 = vmax.xlane.f32.xlu1 %v498_v51 }
 0x222   :  { %502 = vmax.xlane.f32.xlu1 %v501_v52 }
 0x293   :  { %v240_v53 = vpop.xlane.xlu1 %239 }
 0x294   :  { %v248_v54 = vsub.f32 %v221_v28, %v240_v53 }
 0x296   :  { %v253_v55 = vmul.f32 1.442695, %v248_v54 }
 0x297   :  { %v237_v56 = vpop.xlane.xlu1 %236 }
 0x298   :  { %2136 = vpow2.f32 %v253_v55  ;;  %v247_v57 = vsub.f32 %v216_v30, %v237_v56 }
 0x299   :  { %v243_v58 = vpop.xlane.xlu0 %242 }
 0x29a   :  { %v251_v59 = vmul.f32 1.442695, %v247_v57  ;;  %v249_v60 = vsub.f32 %v226_v37, %v243_v58 }
 0x29b   :  { %v246_v61 = vpop.xlane.xlu1 %245 }
 0x29c   :  { %2138 = vpow2.f32 %v251_v59  ;;  %v255_v62 = vmul.f32 1.442695, %v249_v60  ;;  %v250_v63 = vsub.f32 %v231_v36, %v246_v61  ;;  %v646_v61 = vld [vmem:[%s2655_s2 + $0x38] sm:$0xff] }
 0x29d   :  { %2025 = vmatprep.subr.mxu1 %v646_v61 }
 0x29e   :  { %2140 = vpow2.f32 %v255_v62  ;;  %v257_v0 = vmul.f32 1.442695, %v250_v63  ;;  %2026 = vmatpush3.msra.mxu1 %v646_v61  ;;  %v645_v62 = vld [vmem:[%s2655_s2 + $0x30] sm:$0xff]  ;;  %v644_v63 = vld [vmem:[%s2655_s2 + $0x28] sm:$0xff] }
 0x29f   :  { %v497_v1 = vpop.xlane.xlu1 %496  ;;  %2027 = vmatprep.subr.mxu1 %v645_v62 }
 0x2a0   :  { %2142 = vpow2.f32 %v257_v0  ;;  %v505_v3 = vsub.f32 %v479_v42, %v497_v1  ;;  %2028 = vmatpush3.msra.mxu1 %v645_v62  ;;  %v643_v0 = vld [vmem:[%s2655_s2 + $0x20] sm:$0xff] }
 0x2a1   :  { %2029 = vmatprep.subr.mxu1 %v644_v63 }
 0x2a2   :  { %v510_v4 = vmul.f32 1.442695, %v505_v3  ;;  %2030 = vmatpush3.msra.mxu1 %v644_v63  ;;  %v2407_v3 = vld [vmem:[%s2657_s4 + $0x40] sm:$0xff] }
 0x2a3   :  { %v494_v6 = vpop.xlane.xlu1 %493  ;;  %2031 = vmatprep.subr.mxu1 %v643_v0 }
 0x2a4   :  { %2144 = vpow2.f32 %v510_v4  ;;  %v504_v7 = vsub.f32 %v474_v45, %v494_v6  ;;  %2032 = vmatpush3.msra.mxu1 %v643_v0  ;;  %v2412_v4 = vld [vmem:[%s2657_s4 + $0x48] sm:$0xff] }
 0x2a5   :  { %v2137_v8 = vpop.eup %2136 }
 0x2a6   :  { %v508_v11 = vmul.f32 1.442695, %v504_v7  ;;  %v262_v13 = vsel %vm234_vm1, %v2137_v8, 0.0 }
 0x2a7   :  { %263 = vadd.xlane.f32.xlu1 %v262_v13  ;;  %v500_v15 = vpop.xlane.xlu1 %499 }
 0x2a8   :  { %2146 = vpow2.f32 %v508_v11  ;;  %v506_v17 = vsub.f32 %v484_v48, %v500_v15  ;;  %v2418_v11 = vld [vmem:[%s2657_s4 + $0x50] sm:$0xff]  ;;  %v2424_v15 = vld [vmem:[%s2657_s4 + $0x58] sm:$0xff] }
 0x2a9   :  { %v2139_v18 = vpop.eup %2138 }
 0x2aa   :  { %v512_v20 = vmul.f32 1.442695, %v506_v17  ;;  %v259_v21 = vsel %vm234_vm1, %v2139_v18, 0.0 }
 0x2ab   :  { %v2141_v22 = vpop.eup %2140  ;;  %260 = vadd.xlane.f32.xlu1 %v259_v21  ;;  %v503_v23 = vpop.xlane.xlu1 %502 }
 0x2ac   :  { %2148 = vpow2.f32 %v512_v20  ;;  %v507_v24 = vsub.f32 %v489_v50, %v503_v23  ;;  %v265_v27 = vsel %vm234_vm1, %v2141_v22, 0.0 }
 0x2ad   :  { %v2143_v25 = vpop.eup %2142 }
 0x2ae   :  { %v514_v26 = vmul.f32 1.442695, %v507_v24  ;;  %v268_v28 = vsel %vm234_vm1, %v2143_v25, 0.0 }
 0x2af   :  { %266 = vadd.xlane.f32.xlu1 %v265_v27  ;;  %269 = vadd.xlane.f32.xlu0 %v268_v28 }
 0x2b0   :  { %2150 = vpow2.f32 %v514_v26 }
 0x2b1   :  { %v2145_v29 = vpop.eup %2144 }
 0x2b2   :  { %v519_v30 = vsel %vm234_vm1, %v2145_v29, 0.0 }
 0x2b3   :  { %520 = vadd.xlane.f32.xlu0 %v519_v30 }
 0x2b5   :  { %v2147_v31 = vpop.eup %2146 }
 0x2b6   :  { %v516_v32 = vsel %vm234_vm1, %v2147_v31, 0.0 }
 0x2b7   :  { %517 = vadd.xlane.f32.xlu1 %v516_v32 }
 0x2b9   :  { %v2149_v33 = vpop.eup %2148 }
 0x2ba   :  { %v522_v34 = vsel %vm234_vm1, %v2149_v33, 0.0 }
 0x2bb   :  { %523 = vadd.xlane.f32.xlu1 %v522_v34 }
 0x2bd   :  { %v2151_v35 = vpop.eup %2150 }
 0x2be   :  { %v525_v36 = vsel %vm234_vm1, %v2151_v35, 0.0 }
 0x2bf   :  { %526 = vadd.xlane.f32.xlu0 %v525_v36 }
 0x2cc   :  { %279 = vrot.lane.b32.xlu1 %v2298_v9, %s2235_s23 }
 0x2d5   :  { %536 = vrot.lane.b32.xlu0 %v2309_v12, %s2235_s23 }
 0x330   :  { %v264_v37 = vpop.xlane.xlu1 %263 }
 0x334   :  { %v261_v38 = vpop.xlane.xlu1 %260 }
 0x335   :  { %2152 = vrcp.f32 %v261_v38 }
 0x336   :  { %2154 = vrcp.f32 %v264_v37 }
 0x338   :  { %v270_v39 = vpop.xlane.xlu0 %269  ;;  %v267_v40 = vpop.xlane.xlu1 %266 }
 0x339   :  { %2156 = vrcp.f32 %v267_v40 }
 0x33a   :  { %2158 = vrcp.f32 %v270_v39 }
 0x33c   :  { %v521_v41 = vpop.xlane.xlu0 %520 }
 0x33d   :  { %2160 = vrcp.f32 %v521_v41 }
 0x340   :  { %v518_v42 = vpop.xlane.xlu1 %517 }
 0x341   :  { %2162 = vrcp.f32 %v518_v42 }
 0x342   :  { %v2153_v43 = vpop.eup %2152 }
 0x343   :  { %v272_v44 = vmul.f32 %v2153_v43, %v2139_v18  ;;  %v2155_v9 = vpop.eup %2154 }
 0x344   :  { %v524_v45 = vpop.xlane.xlu1 %523  ;;  %v274_v48 = vmul.f32 %v2155_v9, %v2137_v8 }
 0x345   :  { %2164 = vrcp.f32 %v524_v45  ;;  %2003 = vmatprep.mubr.msk.f32.mxu0 %vm234_vm1, %v272_v44 }
 0x346   :  { %v2157_v12 = vpop.eup %2156 }
 0x347   :  { %v2159_v49 = vpop.eup %2158  ;;  %v276_v50 = vmul.f32 %v2157_v12, %v2141_v22 }
 0x348   :  { %v527_v46 = vpop.xlane.xlu0 %526  ;;  %v280_v47 = vpop.permute.xlu1 %279  ;;  %v278_v53 = vmul.f32 %v2159_v49, %v2143_v25 }
 0x349   :  { %2166 = vrcp.f32 %v527_v46  ;;  %2001 = vmatprep.subr.mxu0 %v280_v47 }
 0x34a   :  { %2002 = vmatpush3.msra.mxu0 %v280_v47  ;;  %v2161_v52 = vpop.eup %2160 }
 0x34b   :  { %2004 = vmatmul.mubr.msk.f32.vlgmr.msra.gmra.mxu0 %vm234_vm1, %v274_v48  ;;  %v531_v56 = vmul.f32 %v2161_v52, %v2145_v29  ;;  %v867_v52 = vld [vmem:[%s2655_s2 + $0x68] sm:$0xff] }
 0x34c   :  { %v537_v51 = vpop.permute.xlu0 %536  ;;  %2006 = vmatprep.mubr.msk.f32.mxu0 %vm234_vm1, %v276_v50 }
 0x34d   :  { %2017 = vmatprep.subr.mxu0 %v537_v51 }
 0x34e   :  { %v2163_v54 = vpop.eup %2162  ;;  %2018 = vmatpush3.msra.mxu0 %v537_v51  ;;  %v868_v51 = vld [vmem:[%s2655_s2 + $0x70] sm:$0xff] }
 0x34f   :  { %2007 = vmatmul.mubr.msk.f32.gmra.mxu0 %vm234_vm1, %v278_v53  ;;  %v529_v55 = vmul.f32 %v2163_v54, %v2147_v31  ;;  %v779_v53 = vld [vmem:[%s2655_s2 + $0x58] sm:$0xff]  ;;  %v866_v54 = vld [vmem:[%s2655_s2 + $0x60] sm:$0xff] }
 0x350   :  { %2036 = vmatprep.subr.mxu0 %v779_v53 }
 0x351   :  { %2019 = vmatprep.mubr.msk.f32.mxu0 %vm234_vm1, %v529_v55  ;;  %v778_v55 = vld [vmem:[%s2655_s2 + $0x50] sm:$0xff] }
 0x352   :  { %v2165_v57 = vpop.eup %2164 }
 0x353   :  { %2020 = vmatmul.mubr.msk.f32.vlgmr.msra.gmra.mxu0 %vm234_vm1, %v531_v56  ;;  %v533_v58 = vmul.f32 %v2165_v57, %v2149_v33  ;;  %v23_v56 = vld [vmem:[%s2654_s1] sm:$0xff]  ;;  %v24_v57 = vld [vmem:[%s2654_s1 + $0x8] sm:$0xff] }
 0x354   :  { %2037 = vmatpush3.msra.mxu0 %v779_v53 }
 0x355   :  { %2022 = vmatprep.mubr.msk.f32.mxu0 %vm234_vm1, %v533_v58  ;;  %2038 = vmatprep.subr.mxu0 %v778_v55  ;;  %v777_v58 = vld [vmem:[%s2655_s2 + $0x48] sm:$0xff] }
 0x356   :  { %v2167_v59 = vpop.eup %2166  ;;  %2039 = vmatpush3.msra.mxu0 %v778_v55 }
 0x357   :  { %v535_v60 = vmul.f32 %v2167_v59, %v2151_v35  ;;  %v1856_v35 = vld [vmem:[%s2656_s3 + $0x1] ss:$0 sm:$0xff]  ;;  %2040 = vmatprep.subr.mxu0 %v777_v58 }
 0x358   :  { %v776_v59 = vld [vmem:[%s2655_s2 + $0x40] sm:$0xff]  ;;  %2041 = vmatpush3.msra.mxu0 %v777_v58 }
 0x359   :  { %2023 = vmatmul.mubr.msk.f32.gmra.mxu0 %vm234_vm1, %v535_v60  ;;  %2042 = vmatprep.subr.mxu0 %v776_v59 }
 0x35a   :  { %2043 = vmatpush3.msra.mxu0 %v776_v59 }
 0x40b   :  { %v2005_v1 = vpop.f32.mrf.mxu0 }
 0x40c   :  { %v380_v13 = vmul.f32 %v2005_v1, %v2412_v4 }
 0x40d   :  { %v360_v6 = vpop.f32.mrf.mxu0 }
 0x40e   :  { %v379_v7 = vmul.f32 %v360_v6, %v2407_v3 }
 0x40f   :  { %v2008_v8 = vpop.f32.mrf.mxu0 }
 0x410   :  { %v383_v18 = vadd.f32 %v380_v13, %v379_v7  ;;  %v382_v22 = vmul.f32 %v2008_v8, %v2424_v15  ;;  %v2478_v8 = vld [vmem:[%s2656_s3 + $0x7] ss:$0 sm:$0xff] }
 0x411   :  { %v370_v17 = vpop.f32.mrf.mxu0 }
 0x412   :  { %v381_v20 = vmul.f32 %v370_v17, %v2418_v11 }
 0x413   :  { %v2021_v21 = vpop.f32.mrf.mxu0 }
 0x414   :  { %v384_v23 = vadd.f32 %v383_v18, %v381_v20  ;;  %v637_v28 = vmul.f32 %v2021_v21, %v2412_v4  ;;  %v2484_v20 = vld [vmem:[%s2656_s3 + $0x8] ss:$0 sm:$0xff] }
 0x415   :  { %v617_v24 = vpop.f32.mrf.mxu0 }
 0x416   :  { %v385_v25 = vadd.f32 %v384_v23, %v382_v22  ;;  %v636_v26 = vmul.f32 %v617_v24, %v2407_v3 }
 0x418   :  { %2033 = vmatprep.mubr.msk.f32.mxu1 %vm46_vm0, %v385_v25  ;;  %v640_v30 = vadd.f32 %v637_v28, %v636_v26  ;;  %v1864_v25 = vld [vmem:[%s2656_s3 + $0x3] ss:$0 sm:$0xff] }
 0x419   :  { %v2024_v27 = vpop.f32.mrf.mxu0 }
 0x41a   :  { %v639_v32 = vmul.f32 %v2024_v27, %v2424_v15 }
 0x41b   :  { %v627_v29 = vpop.f32.mrf.mxu0 }
 0x41c   :  { %v638_v31 = vmul.f32 %v627_v29, %v2418_v11 }
 0x41e   :  { %v641_v33 = vadd.f32 %v640_v30, %v638_v31  ;;  %v1861_v30 = vld [vmem:[%s2656_s3 + $0x2] ss:$0 sm:$0xff] }
 0x420   :  { %v642_v34 = vadd.f32 %v641_v33, %v639_v32 }
 0x422   :  { %2034 = vmatmul.mubr.msk.f32.vlgmr.msra.gmra.mxu1 %vm46_vm0, %v642_v34 }
 0x423   :  { %2055 = vmatprep.mubr.msk.f32.mxu1 %vm46_vm0, %v23_v56 }
 0x4e2   :  { %v2035_v36 = vpop.f32.mrf.mxu1 }
 0x4e3   :  { %v730_v37 = vadd.f32 %v2035_v36, %v1856_v35 }
 0x4e4   :  { %v724_v38 = vpop.f32.mrf.mxu1 }
 0x4e5   :  { %v725_v39 = vadd.f32 %v1856_v35, %v724_v38  ;;  %v734_v40 = vadd.f32 %v730_v37, %v2291_v5 }
 0x4e7   :  { %v740_v41 = vsel %vm46_vm0, %v734_v40, 0.0  ;;  %v733_v42 = vadd.f32 %v725_v39, %v2278_v2  ;;  %v869_v2 = vld [vmem:[%s2655_s2 + $0x78] sm:$0xff] }
 0x4e8   :  { %741 = vadd.xlane.f32.xlu0 %v740_v41  ;;  %2047 = vmatprep.subr.mxu1 %v869_v2 }
 0x4e9   :  { %v737_v43 = vsel %vm46_vm0, %v733_v42, 0.0  ;;  %2048 = vmatpush3.msra.mxu1 %v869_v2 }
 0x4ea   :  { %738 = vadd.xlane.f32.xlu1 %v737_v43  ;;  %2049 = vmatprep.subr.mxu1 %v868_v51 }
 0x4eb   :  { %2050 = vmatpush3.msra.mxu1 %v868_v51 }
 0x4ec   :  { %2051 = vmatprep.subr.mxu1 %v867_v52 }
 0x4ed   :  { %2052 = vmatpush3.msra.mxu1 %v867_v52 }
 0x4ee   :  { %2053 = vmatprep.subr.mxu1 %v866_v54 }
 0x4ef   :  { %2054 = vmatpush3.msra.mxu1 %v866_v54 }
 0x4f0   :  { %2056 = vmatmul.mubr.msk.f32.vlgmr.msra.gmra.mxu1 %vm46_vm0, %v24_v57 }
 0x571   :  { %v742_v44 = vpop.xlane.xlu0 %741 }
 0x572   :  { %v745_v45 = vmul.f32 0.03125, %v742_v44 }
 0x573   :  { %v739_v9 = vpop.xlane.xlu1 %738 }
 0x574   :  { %v747_v12 = vsub.f32 %v734_v40, %v745_v45  ;;  %v744_v46 = vmul.f32 0.03125, %v739_v9 }
 0x576   :  { %v746_v47 = vsub.f32 %v733_v42, %v744_v46  ;;  %v749_v48 = vmul.f32 %v747_v12, %v747_v12 }
 0x578   :  { %v753_v49 = vsel %vm46_vm0, %v749_v48, 0.0  ;;  %v748_v50 = vmul.f32 %v746_v47, %v746_v47 }
 0x579   :  { %754 = vadd.xlane.f32.xlu0 %v753_v49 }
 0x57a   :  { %v750_v5 = vsel %vm46_vm0, %v748_v50, 0.0 }
 0x57b   :  { %751 = vadd.xlane.f32.xlu1 %v750_v5 }
 0x5b0   :  { %v2057_v24 = vpop.f32.mrf.mxu1 }
 0x5b1   :  { %v2500_v27 = vadd.f32 %v2057_v24, %v1864_v25 }
 0x5b2   :  { %v947_v26 = vpop.f32.mrf.mxu1 }
 0x5b3   :  { %v2502_v28 = vadd.f32 %v1864_v25, %v947_v26 }
 0x5b5   :  { %2058 = vmatprep.subr.msk.mxu0 %vm46_vm0, %v2502_v28 }
 0x602   :  { %v755_v60 = vpop.xlane.xlu0 %754 }
 0x603   :  { %v757_v61 = vmul.f32 0.03125, %v755_v60 }
 0x604   :  { %v752_v62 = vpop.xlane.xlu1 %751 }
 0x605   :  { %v759_v63 = vadd.f32 1e-05, %v757_v61  ;;  %v756_v0 = vmul.f32 0.03125, %v752_v62 }
 0x607   :  { %2168 = vrsqrt.f32 %v759_v63  ;;  %v758_v1 = vadd.f32 1e-05, %v756_v0 }
 0x609   :  { %2170 = vrsqrt.f32 %v758_v1 }
 0x614   :  { %v2169_v6 = vpop.eup %2168 }
 0x615   :  { %v763_v7 = vmul.f32 %v2169_v6, %v747_v12 }
 0x616   :  { %v2171_v13 = vpop.eup %2170 }
 0x617   :  { %v762_v17 = vmul.f32 %v2171_v13, %v746_v47  ;;  %v769_v18 = vmul.f32 %v2478_v8, %v763_v7 }
 0x619   :  { %v768_v21 = vmul.f32 %v2478_v8, %v762_v17  ;;  %v2491_v23 = vadd.f32 %v2484_v20, %v769_v18 }
 0x61b   :  { %v2488_v22 = vadd.f32 %v2484_v20, %v768_v21 }
 0x61d   :  { %2044 = vmatprep.mubr.msk.f32.mxu0 %vm46_vm0, %v2488_v22 }
 0x61e   :  { %2045 = vmatmul.mubr.msk.f32.vlgmr.msra.gmra.mxu0 %vm46_vm0, %v2491_v23 }
 0x61f   :  { %2059 = vmatpush3.xpose.msk.msra.mxu0 %vm46_vm0, %v2502_v28 }
 0x620   :  { %2074 = vmatprep.subr.msk.mxu0 %vm46_vm0, %v2500_v27 }
 0x6de   :  { %v2046_v29 = vpop.f32.mrf.mxu0 }
 0x6df   :  { %v863_v35 = vadd.f32 %v2046_v29, %v1861_v30 }
 0x6e0   :  { %v857_v31 = vpop.f32.mrf.mxu0 }
 0x6e1   :  { %v858_v32 = vadd.f32 %v1861_v30, %v857_v31  ;;  %v1211_v38 = vmul.f32 %v863_v35, %v2303_v10  ;;  %v1212_v39 = vmul.f32 %v863_v35, %v2319_v14  ;;  %v1213_v40 = vmul.f32 %v863_v35, %v2326_v16 }
 0x6e2   :  { %v1214_v41 = vmul.f32 %v863_v35, %v2337_v19 }
 0x6e3   :  { %v957_v33 = vmul.f32 %v858_v32, %v2319_v14  ;;  %v956_v34 = vmul.f32 %v858_v32, %v2303_v10  ;;  %v958_v36 = vmul.f32 %v858_v32, %v2326_v16  ;;  %v959_v37 = vmul.f32 %v858_v32, %v2337_v19 }
 0x6e5   :  { %2060 = vmatprep.mubr.msk.f32.mxu0 %vm46_vm0, %v956_v34 }
 0x6e6   :  { %2061 = vmatmul.mubr.msk.f32.vlgmr.msra.gmra.mxu0 %vm46_vm0, %v957_v33 }
 0x6e7   :  { %2075 = vmatpush3.xpose.msk.msra.mxu0 %vm46_vm0, %v2500_v27  ;;  %2063 = vmatprep.mubr.msk.f32.mxu0 %vm46_vm0, %v958_v36 }
 0x6ea   :  { %2064 = vmatmul.mubr.msk.f32.gmra.mxu0 %vm46_vm0, %v959_v37 }
 0x6eb   :  { %2076 = vmatprep.mubr.msk.f32.mxu0 %vm46_vm0, %v1211_v38 }
 0x6ee   :  { %2077 = vmatmul.mubr.msk.f32.vlgmr.msra.gmra.mxu0 %vm46_vm0, %v1212_v39 }
 0x6ef   :  { %2079 = vmatprep.mubr.msk.f32.mxu0 %vm46_vm0, %v1213_v40 }
 0x6f2   :  { %2080 = vmatmul.mubr.msk.f32.gmra.mxu0 %vm46_vm0, %v1214_v41 }
 0x7a6   :  { %v2062_v42 = vpop.f32.mrf.mxu0 }
 0x7a7   :  { %v1063_v43 = vsel %vm234_vm1, %v2062_v42, -inf }
 0x7a8   :  { %1064 = vmax.xlane.f32.xlu0 %v1063_v43  ;;  %v1041_v10 = vpop.f32.mrf.mxu0 }
 0x7a9   :  { %v1060_v44 = vsel %vm234_vm1, %v1041_v10, -inf }
 0x7aa   :  { %1061 = vmax.xlane.f32.xlu1 %v1060_v44  ;;  %v2065_v45 = vpop.f32.mrf.mxu0 }
 0x7ab   :  { %v1069_v14 = vsel %vm234_vm1, %v2065_v45, -inf }
 0x7ac   :  { %1070 = vmax.xlane.f32.xlu0 %v1069_v14  ;;  %v1051_v16 = vpop.f32.mrf.mxu0 }
 0x7ad   :  { %v1066_v9 = vsel %vm234_vm1, %v1051_v16, -inf }
 0x7ae   :  { %v2078_v12 = vpop.f32.mrf.mxu0  ;;  %1067 = vmax.xlane.f32.xlu1 %v1066_v9 }
 0x7af   :  { %v1318_v19 = vsel %vm234_vm1, %v2078_v12, -inf }
 0x7b0   :  { %1319 = vmax.xlane.f32.xlu0 %v1318_v19  ;;  %v1296_v46 = vpop.f32.mrf.mxu0 }
 0x7b1   :  { %v1315_v47 = vsel %vm234_vm1, %v1296_v46, -inf }
 0x7b2   :  { %v2081_v48 = vpop.f32.mrf.mxu0  ;;  %1316 = vmax.xlane.f32.xlu1 %v1315_v47 }
 0x7b3   :  { %v1324_v49 = vsel %vm234_vm1, %v2081_v48, -inf }
 0x7b4   :  { %1325 = vmax.xlane.f32.xlu0 %v1324_v49  ;;  %v1306_v50 = vpop.f32.mrf.mxu0 }
 0x7b5   :  { %v1321_v5 = vsel %vm234_vm1, %v1306_v50, -inf }
 0x7b6   :  { %1322 = vmax.xlane.f32.xlu1 %v1321_v5 }
 0x831   :  { %v1065_v2 = vpop.xlane.xlu0 %1064 }
 0x832   :  { %v1073_v51 = vsub.f32 %v2062_v42, %v1065_v2 }
 0x833   :  { %v1062_v52 = vpop.xlane.xlu1 %1061 }
 0x834   :  { %v1078_v53 = vmul.f32 1.442695, %v1073_v51  ;;  %v1072_v54 = vsub.f32 %v1041_v10, %v1062_v52 }
 0x835   :  { %v1071_v55 = vpop.xlane.xlu0 %1070 }
 0x836   :  { %2172 = vpow2.f32 %v1078_v53  ;;  %v1076_v56 = vmul.f32 1.442695, %v1072_v54  ;;  %v1075_v57 = vsub.f32 %v2065_v45, %v1071_v55 }
 0x837   :  { %v1068_v58 = vpop.xlane.xlu1 %1067 }
 0x838   :  { %2174 = vpow2.f32 %v1076_v56  ;;  %v1082_v59 = vmul.f32 1.442695, %v1075_v57  ;;  %v1074_v60 = vsub.f32 %v1051_v16, %v1068_v58 }
 0x839   :  { %v1320_v61 = vpop.xlane.xlu0 %1319 }
 0x83a   :  { %2176 = vpow2.f32 %v1082_v59  ;;  %v1080_v62 = vmul.f32 1.442695, %v1074_v60  ;;  %v1328_v63 = vsub.f32 %v2078_v12, %v1320_v61  ;;  %v1469_v60 = vld [vmem:[%s2655_s2 + $0x98] sm:$0xff]  ;;  %v1468_v61 = vld [vmem:[%s2655_s2 + $0x90] sm:$0xff] }
 0x83b   :  { %v1317_v0 = vpop.xlane.xlu1 %1316  ;;  %2090 = vmatprep.subr.mxu0 %v1469_v60 }
 0x83c   :  { %2178 = vpow2.f32 %v1080_v62  ;;  %v1333_v1 = vmul.f32 1.442695, %v1328_v63  ;;  %v1327_v6 = vsub.f32 %v1296_v46, %v1317_v0  ;;  %2091 = vmatpush3.msra.mxu0 %v1469_v60  ;;  %v1467_v62 = vld [vmem:[%s2655_s2 + $0x88] sm:$0xff]  ;;  %v1466_v63 = vld [vmem:[%s2655_s2 + $0x80] sm:$0xff] }
 0x83d   :  { %v1326_v7 = vpop.xlane.xlu0 %1325  ;;  %2092 = vmatprep.subr.mxu0 %v1468_v61 }
 0x83e   :  { %2180 = vpow2.f32 %v1333_v1  ;;  %v1331_v13 = vmul.f32 1.442695, %v1327_v6  ;;  %v1330_v17 = vsub.f32 %v2081_v48, %v1326_v7  ;;  %2093 = vmatpush3.msra.mxu0 %v1468_v61 }
 0x83f   :  { %v1323_v18 = vpop.xlane.xlu1 %1322  ;;  %2094 = vmatprep.subr.mxu0 %v1467_v62 }
 0x840   :  { %2182 = vpow2.f32 %v1331_v13  ;;  %v1337_v21 = vmul.f32 1.442695, %v1330_v17  ;;  %v1329_v24 = vsub.f32 %v1306_v50, %v1323_v18  ;;  %2095 = vmatpush3.msra.mxu0 %v1467_v62 }
 0x841   :  { %2096 = vmatprep.subr.mxu0 %v1466_v63 }
 0x842   :  { %2184 = vpow2.f32 %v1337_v21  ;;  %v1335_v25 = vmul.f32 1.442695, %v1329_v24  ;;  %2097 = vmatpush3.msra.mxu0 %v1466_v63 }
 0x843   :  { %v2173_v26 = vpop.eup %2172 }
 0x844   :  { %2186 = vpow2.f32 %v1335_v25  ;;  %v1087_v29 = vsel %vm234_vm1, %v2173_v26, 0.0 }
 0x845   :  { %v2175_v30 = vpop.eup %2174  ;;  %1088 = vadd.xlane.f32.xlu0 %v1087_v29 }
 0x846   :  { %v1084_v31 = vsel %vm234_vm1, %v2175_v30, 0.0 }
 0x847   :  { %v2177_v32 = vpop.eup %2176  ;;  %1085 = vadd.xlane.f32.xlu1 %v1084_v31 }
 0x848   :  { %v1093_v33 = vsel %vm234_vm1, %v2177_v32, 0.0 }
 0x849   :  { %v2179_v34 = vpop.eup %2178  ;;  %1094 = vadd.xlane.f32.xlu0 %v1093_v33 }
 0x84a   :  { %v1090_v35 = vsel %vm234_vm1, %v2179_v34, 0.0 }
 0x84b   :  { %v2181_v36 = vpop.eup %2180  ;;  %1091 = vadd.xlane.f32.xlu1 %v1090_v35 }
 0x84c   :  { %v1342_v37 = vsel %vm234_vm1, %v2181_v36, 0.0 }
 0x84d   :  { %v2183_v38 = vpop.eup %2182  ;;  %1343 = vadd.xlane.f32.xlu0 %v1342_v37 }
 0x84e   :  { %v1339_v39 = vsel %vm234_vm1, %v2183_v38, 0.0 }
 0x84f   :  { %v2185_v40 = vpop.eup %2184  ;;  %1340 = vadd.xlane.f32.xlu1 %v1339_v39 }
 0x850   :  { %v1348_v41 = vsel %vm234_vm1, %v2185_v40, 0.0 }
 0x851   :  { %v2187_v42 = vpop.eup %2186  ;;  %1349 = vadd.xlane.f32.xlu0 %v1348_v41 }
 0x852   :  { %v1345_v43 = vsel %vm234_vm1, %v2187_v42, 0.0 }
 0x853   :  { %1346 = vadd.xlane.f32.xlu1 %v1345_v43 }
 0x864   :  { %1104 = vrot.lane.b32.xlu1 %v2502_v28, %s2234_s0 }
 0x867   :  { %1359 = vrot.lane.b32.xlu0 %v2500_v27, %s2234_s0 }
 0x8ce   :  { %v1089_v10 = vpop.xlane.xlu0 %1088 }
 0x8cf   :  { %2188 = vrcp.f32 %v1089_v10 }
 0x8d0   :  { %v1086_v44 = vpop.xlane.xlu1 %1085 }
 0x8d1   :  { %2190 = vrcp.f32 %v1086_v44 }
 0x8d2   :  { %v1095_v45 = vpop.xlane.xlu0 %1094 }
 0x8d3   :  { %2192 = vrcp.f32 %v1095_v45 }
 0x8d4   :  { %v1092_v14 = vpop.xlane.xlu1 %1091 }
 0x8d5   :  { %2194 = vrcp.f32 %v1092_v14 }
 0x8d6   :  { %v1344_v16 = vpop.xlane.xlu0 %1343 }
 0x8d7   :  { %2196 = vrcp.f32 %v1344_v16 }
 0x8d8   :  { %v1341_v9 = vpop.xlane.xlu1 %1340 }
 0x8d9   :  { %2198 = vrcp.f32 %v1341_v9 }
 0x8da   :  { %v1350_v12 = vpop.xlane.xlu0 %1349 }
 0x8db   :  { %2200 = vrcp.f32 %v1350_v12 }
 0x8dc   :  { %v1347_v19 = vpop.xlane.xlu1 %1346  ;;  %v2189_v46 = vpop.eup %2188 }
 0x8dd   :  { %2202 = vrcp.f32 %v1347_v19  ;;  %v1099_v49 = vmul.f32 %v2189_v46, %v2173_v26 }
 0x8de   :  { %v2191_v28 = vpop.eup %2190  ;;  %v1360_v5 = vpop.permute.xlu0 %1359 }
 0x8df   :  { %v1097_v47 = vmul.f32 %v2191_v28, %v2175_v30 }
 0x8e0   :  { %v1105_v27 = vpop.permute.xlu1 %1104  ;;  %v2193_v48 = vpop.eup %2192 }
 0x8e1   :  { %2066 = vmatprep.subr.mxu1 %v1105_v27  ;;  %2068 = vmatprep.mubr.msk.f32.mxu1 %vm234_vm1, %v1097_v47  ;;  %v1103_v52 = vmul.f32 %v2193_v48, %v2177_v32  ;;  %v1590_v47 = vld [vmem:[%s2655_s2 + $0xb0] sm:$0xff]  ;;  %v1588_v48 = vld [vmem:[%s2655_s2 + $0xa0] sm:$0xff] }
 0x8e2   :  { %v2195_v50 = vpop.eup %2194  ;;  %2067 = vmatpush3.msra.mxu1 %v1105_v27  ;;  %v1589_v27 = vld [vmem:[%s2655_s2 + $0xa8] sm:$0xff] }
 0x8e3   :  { %2069 = vmatmul.mubr.msk.f32.vlgmr.msra.gmra.mxu1 %vm234_vm1, %v1099_v49  ;;  %2082 = vmatprep.subr.mxu1 %v1360_v5  ;;  %v1101_v2 = vmul.f32 %v2195_v50, %v2179_v34  ;;  %v1687_v49 = vld [vmem:[%s2655_s2 + $0xf8] sm:$0xff]  ;;  %v1686_v50 = vld [vmem:[%s2655_s2 + $0xf0] sm:$0xff] }
 0x8e4   :  { %2083 = vmatpush3.msra.mxu1 %v1360_v5  ;;  %v2197_v51 = vpop.eup %2196  ;;  %2112 = vmatprep.subr.mxu0 %v1687_v49  ;;  %v1685_v5 = vld [vmem:[%s2655_s2 + $0xe8] sm:$0xff] }
 0x8e5   :  { %2071 = vmatprep.mubr.msk.f32.mxu1 %vm234_vm1, %v1101_v2  ;;  %v1354_v56 = vmul.f32 %v2197_v51, %v2181_v36  ;;  %v1684_v2 = vld [vmem:[%s2655_s2 + $0xe0] sm:$0xff] }
 0x8e6   :  { %v2199_v53 = vpop.eup %2198 }
 0x8e7   :  { %2072 = vmatmul.mubr.msk.f32.gmra.mxu1 %vm234_vm1, %v1103_v52  ;;  %v1352_v54 = vmul.f32 %v2199_v53, %v2183_v38 }
 0x8e8   :  { %v2201_v55 = vpop.eup %2200 }
 0x8e9   :  { %2084 = vmatprep.mubr.msk.f32.mxu1 %vm234_vm1, %v1352_v54  ;;  %v1358_v59 = vmul.f32 %v2201_v55, %v2185_v40  ;;  %v1885_v40 = vld [vmem:[%s2656_s3 + $0x4] ss:$0 sm:$0xff] }
 0x8ea   :  { %v2203_v57 = vpop.eup %2202 }
 0x8eb   :  { %2085 = vmatmul.mubr.msk.f32.vlgmr.msra.gmra.mxu1 %vm234_vm1, %v1354_v56  ;;  %v1356_v58 = vmul.f32 %v2203_v57, %v2187_v42 }
 0x8ed   :  { %2087 = vmatprep.mubr.msk.f32.mxu1 %vm234_vm1, %v1356_v58 }
 0x8ef   :  { %2088 = vmatmul.mubr.msk.f32.gmra.mxu1 %vm234_vm1, %v1358_v59 }
 0x9a3   :  { %v2070_v0 = vpop.f32.mrf.mxu1 }
 0x9a4   :  { %v1205_v13 = vmul.f32 %v2070_v0, %v2412_v4 }
 0x9a5   :  { %v1185_v1 = vpop.f32.mrf.mxu1 }
 0x9a6   :  { %v1204_v6 = vmul.f32 %v1185_v1, %v2407_v3  ;;  %v1683_v1 = vld [vmem:[%s2655_s2 + $0xd8] sm:$0xff] }
 0x9a7   :  { %v2073_v7 = vpop.f32.mrf.mxu1 }
 0x9a8   :  { %v1208_v18 = vadd.f32 %v1205_v13, %v1204_v6  ;;  %v1207_v25 = vmul.f32 %v2073_v7, %v2424_v15  ;;  %v1682_v6 = vld [vmem:[%s2655_s2 + $0xd0] sm:$0xff]  ;;  %v1888_v7 = vld [vmem:[%s2656_s3 + $0x5] ss:$0 sm:$0xff] }
 0x9a9   :  { %v1195_v17 = vpop.f32.mrf.mxu1 }
 0x9aa   :  { %v1206_v21 = vmul.f32 %v1195_v17, %v2418_v11 }
 0x9ab   :  { %v2086_v24 = vpop.f32.mrf.mxu1 }
 0x9ac   :  { %v1209_v26 = vadd.f32 %v1208_v18, %v1206_v21  ;;  %v1460_v33 = vmul.f32 %v2086_v24, %v2412_v4 }
 0x9ad   :  { %v1440_v29 = vpop.f32.mrf.mxu1 }
 0x9ae   :  { %v1210_v30 = vadd.f32 %v1209_v26, %v1207_v25  ;;  %v1459_v31 = vmul.f32 %v1440_v29, %v2407_v3  ;;  %v1891_v26 = vld [vmem:[%s2656_s3 + $0x6] ss:$0 sm:$0xff] }
 0x9af   :  { %v2089_v32 = vpop.f32.mrf.mxu1 }
 0x9b0   :  { %2098 = vmatprep.mubr.msk.f32.mxu0 %vm46_vm0, %v1210_v30  ;;  %v1463_v35 = vadd.f32 %v1460_v33, %v1459_v31  ;;  %v1462_v37 = vmul.f32 %v2089_v32, %v2424_v15 }
 0x9b1   :  { %v1450_v34 = vpop.f32.mrf.mxu1 }
 0x9b2   :  { %v1461_v36 = vmul.f32 %v1450_v34, %v2418_v11 }
 0x9b4   :  { %v1464_v38 = vadd.f32 %v1463_v35, %v1461_v36 }
 0x9b6   :  { %v1465_v39 = vadd.f32 %v1464_v38, %v1462_v37 }
 0x9b8   :  { %2099 = vmatmul.mubr.msk.f32.vlgmr.msra.gmra.mxu0 %vm46_vm0, %v1465_v39 }
 0x9b9   :  { %2113 = vmatpush3.msra.mxu0 %v1687_v49 }
 0x9ba   :  { %2114 = vmatprep.subr.mxu0 %v1686_v50 }
 0x9bb   :  { %2115 = vmatpush3.msra.mxu0 %v1686_v50 }
 0x9bc   :  { %2116 = vmatprep.subr.mxu0 %v1685_v5 }
 0x9bd   :  { %2117 = vmatpush3.msra.mxu0 %v1685_v5 }
 0x9be   :  { %2118 = vmatprep.subr.mxu0 %v1684_v2 }
 0x9bf   :  { %2119 = vmatpush3.msra.mxu0 %v1684_v2 }
 0x9c0   :  { %2120 = vmatprep.subr.mxu0 %v1683_v1 }
 0x9c1   :  { %2121 = vmatpush3.msra.mxu0 %v1683_v1 }
 0x9c2   :  { %2122 = vmatprep.subr.mxu0 %v1682_v6 }
 0x9c3   :  { %2123 = vmatpush3.msra.mxu0 %v1682_v6 }
 0xa78   :  { %v2100_v3 = vpop.f32.mrf.mxu0 }
 0xa79   :  { %v1553_v41 = vadd.f32 %v2100_v3, %v1885_v40 }
 0xa7a   :  { %v1547_v42 = vpop.f32.mrf.mxu0 }
 0xa7b   :  { %v1548_v4 = vadd.f32 %v1885_v40, %v1547_v42  ;;  %v1557_v43 = vadd.f32 %v1553_v41, %v2491_v23 }
 0xa7d   :  { %v1561_v10 = vsel %vm46_vm0, %v1557_v43, 0.0  ;;  %v1556_v11 = vadd.f32 %v1548_v4, %v2488_v22  ;;  %v1591_v22 = vld [vmem:[%s2655_s2 + $0xb8] sm:$0xff] }
 0xa7e   :  { %1562 = vadd.xlane.f32.xlu0 %v1561_v10  ;;  %2101 = vmatprep.subr.mxu1 %v1591_v22 }
 0xa7f   :  { %v1558_v15 = vsel %vm46_vm0, %v1556_v11, 0.0  ;;  %2102 = vmatpush3.msra.mxu1 %v1591_v22 }
 0xa80   :  { %1559 = vadd.xlane.f32.xlu1 %v1558_v15  ;;  %2103 = vmatprep.subr.mxu1 %v1590_v47 }
 0xa81   :  { %2104 = vmatpush3.msra.mxu1 %v1590_v47 }
 0xa82   :  { %2105 = vmatprep.subr.mxu1 %v1589_v27 }
 0xa83   :  { %2106 = vmatpush3.msra.mxu1 %v1589_v27 }
 0xa84   :  { %2107 = vmatprep.subr.mxu1 %v1588_v48 }
 0xa85   :  { %2108 = vmatpush3.msra.mxu1 %v1588_v48 }
 0xb07   :  { %v1563_v44 = vpop.xlane.xlu0 %1562 }
 0xb08   :  { %v1565_v45 = vmul.f32 0.03125, %v1563_v44 }
 0xb09   :  { %v1560_v14 = vpop.xlane.xlu1 %1559 }
 0xb0a   :  { %v1567_v16 = vsub.f32 %v1557_v43, %v1565_v45  ;;  %v1564_v9 = vmul.f32 0.03125, %v1560_v14 }
 0xb0c   :  { %v1566_v12 = vsub.f32 %v1556_v11, %v1564_v9  ;;  %v1569_v19 = vmul.f32 %v1567_v16, %v1567_v16 }
 0xb0e   :  { %v1573_v46 = vsel %vm46_vm0, %v1569_v19, 0.0  ;;  %v1568_v28 = vmul.f32 %v1566_v12, %v1566_v12 }
 0xb0f   :  { %1574 = vadd.xlane.f32.xlu0 %v1573_v46 }
 0xb10   :  { %v1570_v23 = vsel %vm46_vm0, %v1568_v28, 0.0  ;;  %v1895_v28 = vld [vmem:[%s2656_s3 + $0xa] ss:$0 sm:$0xff] }
 0xb11   :  { %1571 = vadd.xlane.f32.xlu1 %v1570_v23 }
 0xb98   :  { %v1575_v51 = vpop.xlane.xlu0 %1574 }
 0xb99   :  { %v1577_v52 = vmul.f32 0.03125, %v1575_v51 }
 0xb9a   :  { %v1572_v53 = vpop.xlane.xlu1 %1571 }
 0xb9b   :  { %v1579_v54 = vadd.f32 1e-05, %v1577_v52  ;;  %v1576_v55 = vmul.f32 0.03125, %v1572_v53 }
 0xb9d   :  { %2204 = vrsqrt.f32 %v1579_v54  ;;  %v1578_v56 = vadd.f32 1e-05, %v1576_v55 }
 0xb9f   :  { %2206 = vrsqrt.f32 %v1578_v56 }
 0xbaa   :  { %v2205_v57 = vpop.eup %2204 }
 0xbab   :  { %v1583_v58 = vmul.f32 %v2205_v57, %v1567_v16 }
 0xbac   :  { %v2207_v59 = vpop.eup %2206 }
 0xbad   :  { %v1582_v60 = vmul.f32 %v2207_v59, %v1566_v12  ;;  %v1585_v61 = vmul.f32 %v2478_v8, %v1583_v58  ;;  %v1894_v12 = vld [vmem:[%s2656_s3 + $0x9] ss:$0 sm:$0xff] }
 0xbaf   :  { %v1584_v62 = vmul.f32 %v2478_v8, %v1582_v60  ;;  %v1587_v0 = vadd.f32 %v2484_v20, %v1585_v61  ;;  %v1681_v8 = vld [vmem:[%s2655_s2 + $0xc8] sm:$0xff] }
 0xbb0   :  { %2124 = vmatprep.subr.mxu0 %v1681_v8 }
 0xbb1   :  { %v1586_v63 = vadd.f32 %v2484_v20, %v1584_v62  ;;  %v1680_v20 = vld [vmem:[%s2655_s2 + $0xc0] sm:$0xff]  ;;  %2125 = vmatpush3.msra.mxu0 %v1681_v8 }
 0xbb2   :  { %2126 = vmatprep.subr.mxu0 %v1680_v20 }
 0xbb3   :  { %2109 = vmatprep.mubr.msk.f32.mxu1 %vm46_vm0, %v1586_v63  ;;  %2127 = vmatpush3.msra.mxu0 %v1680_v20 }
 0xbb4   :  { %2110 = vmatmul.mubr.msk.f32.vlgmr.msra.gmra.mxu1 %vm46_vm0, %v1587_v0 }
 0xc74   :  { %v2111_v13 = vpop.f32.mrf.mxu1 }
 0xc75   :  { %v1675_v17 = vadd.f32 %v2111_v13, %v1888_v7 }
 0xc76   :  { %v1669_v18 = vpop.f32.mrf.mxu1 }
 0xc77   :  { %v1670_v21 = vadd.f32 %v1888_v7, %v1669_v18  ;;  %v1679_v25 = vmax.f32 %v1675_v17, 0.0 }
 0xc79   :  { %v1678_v24 = vmax.f32 %v1670_v21, 0.0 }
 0xc7b   :  { %2128 = vmatprep.mubr.msk.f32.mxu0 %vm1693_vm2, %v1678_v24 }
 0xc7c   :  { %2129 = vmatmul.mubr.msk.f32.vlgmr.msra.gmra.mxu0 %vm1693_vm2, %v1679_v25 }
 0xd3c   :  { %v2130_v29 = vpop.f32.mrf.mxu0 }
 0xd3d   :  { %v1772_v30 = vadd.f32 %v2130_v29, %v1891_v26 }
 0xd3e   :  { %v1766_v31 = vpop.f32.mrf.mxu0 }
 0xd3f   :  { %v1767_v32 = vadd.f32 %v1891_v26, %v1766_v31  ;;  %v1776_v33 = vadd.f32 %v1772_v30, %v1587_v0 }
 0xd41   :  { %v1782_v34 = vsel %vm46_vm0, %v1776_v33, 0.0  ;;  %v1775_v35 = vadd.f32 %v1767_v32, %v1586_v63 }
 0xd42   :  { %1783 = vadd.xlane.f32.xlu0 %v1782_v34 }
 0xd43   :  { %v1779_v36 = vsel %vm46_vm0, %v1775_v35, 0.0 }
 0xd44   :  { %1780 = vadd.xlane.f32.xlu1 %v1779_v36 }
 0xdcb   :  { %v1784_v37 = vpop.xlane.xlu0 %1783 }
 0xdcc   :  { %v1786_v38 = vmul.f32 0.03125, %v1784_v37 }
 0xdcd   :  { %v1781_v39 = vpop.xlane.xlu1 %1780 }
 0xdce   :  { %v1788_v40 = vsub.f32 %v1776_v33, %v1786_v38  ;;  %v1785_v3 = vmul.f32 0.03125, %v1781_v39 }
 0xdd0   :  { %v1787_v41 = vsub.f32 %v1775_v35, %v1785_v3  ;;  %v1790_v42 = vmul.f32 %v1788_v40, %v1788_v40 }
 0xdd2   :  { %v1794_v4 = vsel %vm46_vm0, %v1790_v42, 0.0  ;;  %v1789_v43 = vmul.f32 %v1787_v41, %v1787_v41 }
 0xdd3   :  { %1795 = vadd.xlane.f32.xlu0 %v1794_v4 }
 0xdd4   :  { %v1791_v10 = vsel %vm46_vm0, %v1789_v43, 0.0 }
 0xdd5   :  { %1792 = vadd.xlane.f32.xlu1 %v1791_v10 }
 0xe5c   :  { %v1796_v11 = vpop.xlane.xlu0 %1795 }
 0xe5d   :  { %v1798_v15 = vmul.f32 0.03125, %v1796_v11 }
 0xe5e   :  { %v1793_v44 = vpop.xlane.xlu1 %1792 }
 0xe5f   :  { %v1800_v45 = vadd.f32 1e-05, %v1798_v15  ;;  %v1797_v14 = vmul.f32 0.03125, %v1793_v44 }
 0xe61   :  { %2208 = vrsqrt.f32 %v1800_v45  ;;  %v1799_v16 = vadd.f32 1e-05, %v1797_v14 }
 0xe63   :  { %2210 = vrsqrt.f32 %v1799_v16 }
 0xe6e   :  { %v2209_v9 = vpop.eup %2208 }
 0xe6f   :  { %v1804_v19 = vmul.f32 %v2209_v9, %v1788_v40 }
 0xe70   :  { %v2211_v46 = vpop.eup %2210 }
 0xe71   :  { %v1803_v23 = vmul.f32 %v2211_v46, %v1787_v41  ;;  %v1810_v22 = vmul.f32 %v1894_v12, %v1804_v19 }
 0xe73   :  { %v1809_v47 = vmul.f32 %v1894_v12, %v1803_v23  ;;  %v1816_v27 = vadd.f32 %v1895_v28, %v1810_v22 }
 0xe75   :  { %v1815_v48 = vadd.f32 %v1895_v28, %v1809_v47  ;;  %1818 = vst.msk [vmem:[#allocation2 + $0x8] sm:$0xff] %vm46_vm0, %v1816_v27 }
 0xe77   :  { %1817 = vst.msk [vmem:[#allocation2] sm:$0xff] %vm46_vm0, %v1815_v48 }
 0xe78   :  { %2223 = shalt.err (!%p2220_p4)
}
 0xe79   :  { %s2237_s3 = smov 128   ;;  %s2238_s7 = smov 8  }
 0xe7a   :  { %1830 = dma.vmem_to_hbm [thread:$0]  %s1825_s30, 256, %s2658_s5, [#allocation3], %s2237_s3, %s2237_s3, %s2238_s7  }
 0xe7b   :  { %2232 = dma.done.wait [#allocation3], 256  }
 0xe7c   :  { %2233 = vsyncadd [#allocation3], 4294967040 }
 0xe7d   :  { %1834 = vsyncpa [#allocation3], 1 }

</bundles_post_ra>
